<compile_context>
chip_gen: v7x
topology: tpu7x:2x2x1
jax: 0.10.0
libtpu: 0.0.40
codegen_flags: <defaults>
</compile_context>

<pallas_src>
import functools

import jax
import jax.numpy as jnp
from jax import lax
from jax.experimental import pallas as pl
from jax.experimental.pallas import tpu as pltpu

BN_EPS = 1e-5
LANE = 128   # lane-dense padded width of every hidden / output dim


def _round_up(n, m):
    return ((n + m - 1) // m) * m


def _make_kernel(b_true, tile_b, num_tiles):
    """Build the 3-pass kernel for a fixed (static) batch / tiling config."""
    inv_b = 1.0 / float(b_true)
    last_t = num_tiles - 1
    need_mask = (num_tiles * tile_b) != b_true   # padded batch rows present?

    def kernel(x_ref, w1_ref, w2_ref, w3_ref, p_ref, o_ref, stats):
        # p_ref rows:  0=b1 1=g1 2=be1 3=b2 4=g2 5=be2 6=b3 7=pad
        # stats rows:  0=sum1 1=sumsq1 2=sum2 3=sumsq2
        #              4=scale1 5=shift1 6=scale2 7=shift2
        p = pl.program_id(0)   # pass index 0..2 (sequential, outer)
        t = pl.program_id(1)   # batch-tile index (inner, fastest varying)

        b1, g1, be1 = p_ref[0:1, :], p_ref[1:2, :], p_ref[2:3, :]
        b2, g2, be2 = p_ref[3:4, :], p_ref[4:5, :], p_ref[5:6, :]
        b3 = p_ref[6:7, :]

        @pl.when((p == 0) & (t == 0))
        def _init():
            stats[...] = jnp.zeros_like(stats)

        def mask_rows(h):
            # Zero padded batch rows so they don't pollute the BN statistics.
            if not need_mask:
                return h
            rows = t * tile_b + lax.broadcasted_iota(jnp.int32, (tile_b, 1), 0)
            return jnp.where(rows < b_true, h, 0.0)

        def accumulate(h, row_s, row_ss):
            hm = mask_rows(h)
            stats[row_s:row_s + 1, :] += jnp.sum(hm, axis=0, keepdims=True)
            stats[row_ss:row_ss + 1, :] += jnp.sum(hm * hm, axis=0,
                                                   keepdims=True)

        def finalize(row_s, row_ss, gamma, beta, row_scale, row_shift):
            mu = stats[row_s:row_s + 1, :] * inv_b
            var = stats[row_ss:row_ss + 1, :] * inv_b - mu * mu
            var = jnp.maximum(var, 0.0)           # guard f32 cancellation
            scale = gamma * lax.rsqrt(var + BN_EPS)
            stats[row_scale:row_scale + 1, :] = scale
            stats[row_shift:row_shift + 1, :] = beta - mu * scale

        def layer1():
            h = jnp.dot(x_ref[...], w1_ref[...],
                        preferred_element_type=jnp.float32) + b1
            return jnp.maximum(h, 0.0)

        def layer2():
            h1n = layer1() * stats[4:5, :] + stats[5:6, :]      # fused BN1
            h = jnp.dot(h1n, w2_ref[...],
                        preferred_element_type=jnp.float32) + b2
            return jnp.maximum(h, 0.0)

        # ---- pass 0: BN1 statistics over the whole batch --------------------
        @pl.when(p == 0)
        def _pass0():
            accumulate(layer1(), 0, 1)

        @pl.when((p == 0) & (t == last_t))
        def _fin1():
            finalize(0, 1, g1, be1, 4, 5)

        # ---- pass 1: BN2 statistics (recompute h1, apply BN1) ---------------
        @pl.when(p == 1)
        def _pass1():
            accumulate(layer2(), 2, 3)

        @pl.when((p == 1) & (t == last_t))
        def _fin2():
            finalize(2, 3, g2, be2, 6, 7)

        # ---- pass 2: apply BN2 and final linear head -------------------------
        @pl.when(p == 2)
        def _pass2():
            h2n = layer2() * stats[6:7, :] + stats[7:8, :]      # fused BN2
            o_ref[...] = (jnp.dot(h2n, w3_ref[...],
                                  preferred_element_type=jnp.float32)
                          + b3).astype(o_ref.dtype)

    return kernel


@functools.partial(jax.jit, static_argnames=("tile_b",))
def whatfaces_forward(x, packed, *, tile_b=256):
    W1, W2, W3, slab = packed
    B, d_in = x.shape
    d_pad = W1.shape[0]

    tm = min(tile_b, _round_up(B, 8))        # batch rows per tile (mult. of 8)
    num_tiles = -(-B // tm)
    b_pad = num_tiles * tm

    # Lane-dense, zero-padded input slab (padded rows masked out of BN stats).
    x_pad = jnp.zeros((b_pad, d_pad), jnp.float32).at[:B, :d_in].set(x)

    kernel = _make_kernel(B, tm, num_tiles)
    out = pl.pallas_call(
        kernel,
        out_shape=jax.ShapeDtypeStruct((b_pad, LANE), jnp.float32),
        grid_spec=pltpu.PrefetchScalarGridSpec(
            num_scalar_prefetch=0,
            grid=(3, num_tiles),                  # (pass, batch tile)
            in_specs=[
                pl.BlockSpec((tm, d_pad), lambda p, t: (t, 0)),     # x tile
                pl.BlockSpec((d_pad, LANE), lambda p, t: (0, 0)),   # W1 resident
                pl.BlockSpec((LANE, LANE), lambda p, t: (0, 0)),    # W2 resident
                pl.BlockSpec((LANE, LANE), lambda p, t: (0, 0)),    # W3 resident
                pl.BlockSpec((8, LANE), lambda p, t: (0, 0)),       # slab resident
            ],
            out_specs=pl.BlockSpec((tm, LANE), lambda p, t: (t, 0)),
            scratch_shapes=[pltpu.VMEM((8, LANE), jnp.float32)],    # BN stats
        ),
        compiler_params=pltpu.CompilerParams(
            dimension_semantics=("arbitrary", "arbitrary"),
            vmem_limit_bytes=32 * 1024 * 1024,    # working set < ~2 MiB
        ),
    )(x_pad, W1, W2, W3, slab)
    return out[:B, :2]   # drop padded batch rows and padded logit lanes


def prepare_params(params):
    """Zero-pad weights to lane-dense (…,128) and pack the seven small vectors
    into one (8,128) f32 slab (rows: b1,g1,be1,b2,g2,be2,b3,pad).

    Correctness invariant: padding MUST be exactly zero — padded lanes of
    h1/h2 then stay 0 through ReLU/BatchNorm and contribute nothing via the
    next matmul, and padded logit columns stay 0."""
    (w1, b1, g1, be1, w2, b2, g2, be2, w3, b3) = params
    d_in, dim1 = w1.shape
    dim2, n_out = w3.shape[0], w3.shape[1]
    assert dim1 <= LANE and dim2 <= LANE and n_out <= LANE, (
        "this packing assumes hidden/output dims <= 128")
    d_pad = _round_up(d_in, LANE)

    def pad_w(w, rows, cols):
        return (jnp.zeros((rows, cols), jnp.float32)
                .at[:w.shape[0], :w.shape[1]].set(w))

    W1 = pad_w(w1, d_pad, LANE)
    W2 = pad_w(w2, LANE, LANE)
    W3 = pad_w(w3, LANE, LANE)

    def pad_v(v):
        v = v.reshape(-1)
        return jnp.zeros((LANE,), jnp.float32).at[:v.shape[0]].set(v)

    slab = jnp.stack([pad_v(b1), pad_v(g1), pad_v(be1),
                      pad_v(b2), pad_v(g2), pad_v(be2),
                      pad_v(b3), jnp.zeros((LANE,), jnp.float32)])
    return (W1, W2, W3, slab)


def _reference_forward(x, params):
    """Pure-JAX f32 reference with exact module semantics (training-mode BN,
    biased variance, eps=1e-5)."""
    (w1, b1, g1, be1, w2, b2, g2, be2, w3, b3) = params

    def mm(a, w):
        return jnp.dot(a, w, precision=lax.Precision.HIGHEST)

    h1 = jnp.maximum(mm(x, w1) + b1, 0.0)
    mu1 = jnp.mean(h1, axis=0, keepdims=True)
    var1 = jnp.mean((h1 - mu1) ** 2, axis=0, keepdims=True)
    h1 = (h1 - mu1) / jnp.sqrt(var1 + BN_EPS) * g1 + be1
    h2 = jnp.maximum(mm(h1, w2) + b2, 0.0)
    mu2 = jnp.mean(h2, axis=0, keepdims=True)
    var2 = jnp.mean((h2 - mu2) ** 2, axis=0, keepdims=True)
    h2 = (h2 - mu2) / jnp.sqrt(var2 + BN_EPS) * g2 + be2
    return mm(h2, w3) + b3


def init_params(key, d_in, dim1, dim2):
    """Deterministic PyTorch-Linear-style init (uniform ±1/sqrt(fan_in))."""
    ks = jax.random.split(key, 6)

    def lin(kw, kb, fan_in, fan_out):
        bound = 1.0 / jnp.sqrt(fan_in)
        w = jax.random.uniform(kw, (fan_in, fan_out), jnp.float32, -bound, bound)
        b = jax.random.uniform(kb, (1, fan_out), jnp.float32, -bound, bound)
        return w, b

    w1, b1 = lin(ks[0], ks[1], d_in, dim1)
    w2, b2 = lin(ks[2], ks[3], dim1, dim2)
    w3, b3 = lin(ks[4], ks[5], dim2, 2)
    # BatchNorm affine params (PyTorch default init: gamma=1, beta=0)
    g1, be1 = jnp.ones((1, dim1), jnp.float32), jnp.zeros((1, dim1), jnp.float32)
    g2, be2 = jnp.ones((1, dim2), jnp.float32), jnp.zeros((1, dim2), jnp.float32)
    return (w1, b1, g1, be1, w2, b2, g2, be2, w3, b3)


if __name__ == "__main__":
    # args: N_theta=2, N_azimuth=4, N_eccentricity=4, N_phase=2  -> D_in = 64
    #       dim1=64, dim2=32, bias_deconv=True,
    #       bn1_bn_momentum=0.5>0, bn2_bn_momentum=0.5>0, p_dropout=0
    N_theta, N_azimuth, N_eccentricity, N_phase = 2, 4, 4, 2
    D_IN = N_theta * N_azimuth * N_eccentricity * N_phase   # 64
    DIM1, DIM2 = 64, 32
    B = 100        # not a multiple of the tile -> exercises the row mask
    TILE_B = 32    # 4 batch tiles -> exercises the multi-tile two-pass BN path

    key = jax.random.PRNGKey(0)
    k_x, k_p = jax.random.split(key)
    x = jax.random.normal(k_x, (B, D_IN), jnp.float32)
    params = init_params(k_p, D_IN, DIM1, DIM2)
    packed = prepare_params(params)

    out = whatfaces_forward(x, packed, tile_b=TILE_B)
    out = jax.block_until_ready(out)

    ref = _reference_forward(x, params)
    assert out.shape == (B, 2), out.shape
    err = float(jnp.max(jnp.abs(out - ref)))
    assert jnp.allclose(out, ref, atol=2e-3, rtol=2e-3), f"max abs err {err}"

    print("KERNEL_OK")
</pallas_src>

<mosaic_0001>
module attributes {stable_mosaic.version = 11 : i64} {
  func.func @kernel(%arg0: i32, %arg1: i32, %arg2: memref<32x128xf32, #tpu.memory_space<vmem>>, %arg3: memref<128x128xf32, #tpu.memory_space<vmem>>, %arg4: memref<128x128xf32, #tpu.memory_space<vmem>>, %arg5: memref<128x128xf32, #tpu.memory_space<vmem>>, %arg6: memref<8x128xf32, #tpu.memory_space<vmem>>, %arg7: memref<32x128xf32, #tpu.memory_space<vmem>>, %arg8: memref<8x128xf32, #tpu.memory_space<vmem>>) attributes {dimension_semantics = [#tpu.dimension_semantics<arbitrary>, #tpu.dimension_semantics<arbitrary>], iteration_bounds = array<i64: 3, 4>, scalar_prefetch = 0 : i64, scratch_operands = 1 : i64, tpu.core_type = #tpu.core_type<tc>, window_params = [{transform_indices = @transform_0, window_bounds = array<i64: 32, 128>}, {pipeline_mode = #tpu.pipeline_mode<synchronous>, transform_indices = @transform_1, window_bounds = array<i64: 128, 128>}, {pipeline_mode = #tpu.pipeline_mode<synchronous>, transform_indices = @transform_2, window_bounds = array<i64: 128, 128>}, {pipeline_mode = #tpu.pipeline_mode<synchronous>, transform_indices = @transform_3, window_bounds = array<i64: 128, 128>}, {pipeline_mode = #tpu.pipeline_mode<synchronous>, transform_indices = @transform_4, window_bounds = array<i64: 8, 128>}, {transform_indices = @transform_5, window_bounds = array<i64: 32, 128>}]} {
    %c0 = arith.constant 0 : index
    %c0_0 = arith.constant 0 : index
    %0 = vector.load %arg6[%c0, %c0_0] : memref<8x128xf32, #tpu.memory_space<vmem>>, vector<1x128xf32>
    %c1 = arith.constant 1 : index
    %c0_1 = arith.constant 0 : index
    %1 = vector.load %arg6[%c1, %c0_1] : memref<8x128xf32, #tpu.memory_space<vmem>>, vector<1x128xf32>
    %c2 = arith.constant 2 : index
    %c0_2 = arith.constant 0 : index
    %2 = vector.load %arg6[%c2, %c0_2] : memref<8x128xf32, #tpu.memory_space<vmem>>, vector<1x128xf32>
    %c3 = arith.constant 3 : index
    %c0_3 = arith.constant 0 : index
    %3 = vector.load %arg6[%c3, %c0_3] : memref<8x128xf32, #tpu.memory_space<vmem>>, vector<1x128xf32>
    %c4 = arith.constant 4 : index
    %c0_4 = arith.constant 0 : index
    %4 = vector.load %arg6[%c4, %c0_4] : memref<8x128xf32, #tpu.memory_space<vmem>>, vector<1x128xf32>
    %c5 = arith.constant 5 : index
    %c0_5 = arith.constant 0 : index
    %5 = vector.load %arg6[%c5, %c0_5] : memref<8x128xf32, #tpu.memory_space<vmem>>, vector<1x128xf32>
    %c6 = arith.constant 6 : index
    %c0_6 = arith.constant 0 : index
    %6 = vector.load %arg6[%c6, %c0_6] : memref<8x128xf32, #tpu.memory_space<vmem>>, vector<1x128xf32>
    %c0_i32 = arith.constant 0 : i32
    %7 = arith.cmpi eq, %arg0, %c0_i32 : i32
    %c0_i32_7 = arith.constant 0 : i32
    %8 = arith.cmpi eq, %arg1, %c0_i32_7 : i32
    %9 = arith.andi %7, %8 : i1
    %10 = arith.extui %9 : i1 to i32
    %c0_i32_8 = arith.constant 0 : i32
    %11 = arith.cmpi ne, %10, %c0_i32_8 : i32
    scf.if %11 {
      %cst = arith.constant 0.000000e+00 : f32
      %31 = vector.broadcast %cst : f32 to vector<8x128xf32>
      %c0_18 = arith.constant 0 : index
      %c0_19 = arith.constant 0 : index
      %32 = vector.load %arg8[%c0_18, %c0_19] : memref<8x128xf32, #tpu.memory_space<vmem>>, vector<8x128xf32>
      tpu.vector_store %arg8[%c0_18, %c0_19], %31 {strides = array<i32>} : memref<8x128xf32, #tpu.memory_space<vmem>>, vector<8x128xf32>,
    } else {
    }
    %c0_i32_9 = arith.constant 0 : i32
    %12 = arith.cmpi eq, %arg0, %c0_i32_9 : i32
    %13 = arith.extui %12 : i1 to i32
    %c0_i32_10 = arith.constant 0 : i32
    %14 = arith.cmpi ne, %13, %c0_i32_10 : i32
    scf.if %14 {
      %c0_18 = arith.constant 0 : index
      %c0_19 = arith.constant 0 : index
      %31 = vector.load %arg2[%c0_18, %c0_19] : memref<32x128xf32, #tpu.memory_space<vmem>>, vector<32x128xf32>
      %c0_20 = arith.constant 0 : index
      %c0_21 = arith.constant 0 : index
      %32 = vector.load %arg3[%c0_20, %c0_21] : memref<128x128xf32, #tpu.memory_space<vmem>>, vector<128x128xf32>
      %cst = arith.constant dense<0.000000e+00> : vector<32x128xf32>
      %33 = tpu.matmul %31, %32, %cst {dimension_numbers = #tpu.dot_dimension_numbers<[1], [0], [0], [1], [0, 0, 1, 1], [], []>} : vector<32x128xf32>, vector<128x128xf32>, vector<32x128xf32> -> vector<32x128xf32>
      %34 = vector.broadcast %0 : vector<1x128xf32> to vector<32x128xf32>
      %35 = arith.addf %33, %34 : vector<32x128xf32>
      %cst_22 = arith.constant 0.000000e+00 : f32
      %36 = vector.broadcast %cst_22 : f32 to vector<32x128xf32>
      %37 = arith.maximumf %35, %36 : vector<32x128xf32>
      %c32_i32 = arith.constant 32 : i32
      %38 = arith.muli %arg1, %c32_i32 : i32
      %39 = tpu.iota {dimensions = array<i32: 0>} : vector<32x1xi32>
      %40 = vector.broadcast %38 : i32 to vector<32x1xi32>
      %41 = arith.addi %40, %39 : vector<32x1xi32>
      %c100_i32 = arith.constant 100 : i32
      %42 = vector.broadcast %c100_i32 : i32 to vector<32x1xi32>
      %43 = arith.cmpi slt, %41, %42 : vector<32x1xi32>
      %cst_23 = arith.constant 0.000000e+00 : f32
      %44 = vector.shape_cast %43 : vector<32x1xi1> to vector<32x1xi1>
      %45 = vector.broadcast %44 : vector<32x1xi1> to vector<32x128xi1>
      %46 = vector.broadcast %cst_23 : f32 to vector<32x128xf32>
      %47 = arith.select %45, %37, %46 : vector<32x128xi1>, vector<32x128xf32>
      %c0_24 = arith.constant 0 : index
      %c0_25 = arith.constant 0 : index
      %48 = vector.load %arg8[%c0_24, %c0_25] : memref<8x128xf32, #tpu.memory_space<vmem>>, vector<1x128xf32>
      %cst_26 = arith.constant dense<0.000000e+00> : vector<128xf32>
      %49 = vector.multi_reduction <add>, %47, %cst_26 [0] : vector<32x128xf32> to vector<128xf32>
      %50 = vector.shape_cast %49 : vector<128xf32> to vector<1x128xf32>
      %51 = arith.addf %48, %50 : vector<1x128xf32>
      %c0_27 = arith.constant 0 : index
      %c0_28 = arith.constant 0 : index
      %52 = vector.load %arg8[%c0_27, %c0_28] : memref<8x128xf32, #tpu.memory_space<vmem>>, vector<1x128xf32>
      tpu.vector_store %arg8[%c0_27, %c0_28], %51 {strides = array<i32>} : memref<8x128xf32, #tpu.memory_space<vmem>>, vector<1x128xf32>,
      %c1_29 = arith.constant 1 : index
      %c0_30 = arith.constant 0 : index
      %53 = vector.load %arg8[%c1_29, %c0_30] : memref<8x128xf32, #tpu.memory_space<vmem>>, vector<1x128xf32>
      %54 = arith.mulf %47, %47 : vector<32x128xf32>
      %cst_31 = arith.constant dense<0.000000e+00> : vector<128xf32>
      %55 = vector.multi_reduction <add>, %54, %cst_31 [0] : vector<32x128xf32> to vector<128xf32>
      %56 = vector.shape_cast %55 : vector<128xf32> to vector<1x128xf32>
      %57 = arith.addf %53, %56 : vector<1x128xf32>
      %c1_32 = arith.constant 1 : index
      %c0_33 = arith.constant 0 : index
      %58 = vector.load %arg8[%c1_32, %c0_33] : memref<8x128xf32, #tpu.memory_space<vmem>>, vector<1x128xf32>
      tpu.vector_store %arg8[%c1_32, %c0_33], %57 {strides = array<i32>} : memref<8x128xf32, #tpu.memory_space<vmem>>, vector<1x128xf32>,
    } else {
    }
    %c0_i32_11 = arith.constant 0 : i32
    %15 = arith.cmpi eq, %arg0, %c0_i32_11 : i32
    %c3_i32 = arith.constant 3 : i32
    %16 = arith.cmpi eq, %arg1, %c3_i32 : i32
    %17 = arith.andi %15, %16 : i1
    %18 = arith.extui %17 : i1 to i32
    %c0_i32_12 = arith.constant 0 : i32
    %19 = arith.cmpi ne, %18, %c0_i32_12 : i32
    scf.if %19 {
      %c0_18 = arith.constant 0 : index
      %c0_19 = arith.constant 0 : index
      %31 = vector.load %arg8[%c0_18, %c0_19] : memref<8x128xf32, #tpu.memory_space<vmem>>, vector<1x128xf32>
      %cst = arith.constant 0.00999999977 : f32
      %32 = vector.broadcast %cst : f32 to vector<1x128xf32>
      %33 = arith.mulf %31, %32 : vector<1x128xf32>
      %c1_20 = arith.constant 1 : index
      %c0_21 = arith.constant 0 : index
      %34 = vector.load %arg8[%c1_20, %c0_21] : memref<8x128xf32, #tpu.memory_space<vmem>>, vector<1x128xf32>
      %cst_22 = arith.constant 0.00999999977 : f32
      %35 = vector.broadcast %cst_22 : f32 to vector<1x128xf32>
      %36 = arith.mulf %34, %35 : vector<1x128xf32>
      %37 = arith.mulf %33, %33 : vector<1x128xf32>
      %38 = arith.subf %36, %37 : vector<1x128xf32>
      %cst_23 = arith.constant 0.000000e+00 : f32
      %39 = vector.broadcast %cst_23 : f32 to vector<1x128xf32>
      %40 = arith.maximumf %38, %39 : vector<1x128xf32>
      %cst_24 = arith.constant 9.99999974E-6 : f32
      %41 = vector.broadcast %cst_24 : f32 to vector<1x128xf32>
      %42 = arith.addf %40, %41 : vector<1x128xf32>
      %43 = math.rsqrt %42 : vector<1x128xf32>
      %44 = arith.mulf %1, %43 : vector<1x128xf32>
      %c4_25 = arith.constant 4 : index
      %c0_26 = arith.constant 0 : index
      %45 = vector.load %arg8[%c4_25, %c0_26] : memref<8x128xf32, #tpu.memory_space<vmem>>, vector<1x128xf32>
      tpu.vector_store %arg8[%c4_25, %c0_26], %44 {strides = array<i32>} : memref<8x128xf32, #tpu.memory_space<vmem>>, vector<1x128xf32>,
      %46 = arith.mulf %33, %44 : vector<1x128xf32>
      %47 = arith.subf %2, %46 : vector<1x128xf32>
      %c5_27 = arith.constant 5 : index
      %c0_28 = arith.constant 0 : index
      %48 = vector.load %arg8[%c5_27, %c0_28] : memref<8x128xf32, #tpu.memory_space<vmem>>, vector<1x128xf32>
      tpu.vector_store %arg8[%c5_27, %c0_28], %47 {strides = array<i32>} : memref<8x128xf32, #tpu.memory_space<vmem>>, vector<1x128xf32>,
    } else {
    }
    %c1_i32 = arith.constant 1 : i32
    %20 = arith.cmpi eq, %arg0, %c1_i32 : i32
    %21 = arith.extui %20 : i1 to i32
    %c0_i32_13 = arith.constant 0 : i32
    %22 = arith.cmpi ne, %21, %c0_i32_13 : i32
    scf.if %22 {
      %c0_18 = arith.constant 0 : index
      %c0_19 = arith.constant 0 : index
      %31 = vector.load %arg2[%c0_18, %c0_19] : memref<32x128xf32, #tpu.memory_space<vmem>>, vector<32x128xf32>
      %c0_20 = arith.constant 0 : index
      %c0_21 = arith.constant 0 : index
      %32 = vector.load %arg3[%c0_20, %c0_21] : memref<128x128xf32, #tpu.memory_space<vmem>>, vector<128x128xf32>
      %cst = arith.constant dense<0.000000e+00> : vector<32x128xf32>
      %33 = tpu.matmul %31, %32, %cst {dimension_numbers = #tpu.dot_dimension_numbers<[1], [0], [0], [1], [0, 0, 1, 1], [], []>} : vector<32x128xf32>, vector<128x128xf32>, vector<32x128xf32> -> vector<32x128xf32>
      %34 = vector.broadcast %0 : vector<1x128xf32> to vector<32x128xf32>
      %35 = arith.addf %33, %34 : vector<32x128xf32>
      %cst_22 = arith.constant 0.000000e+00 : f32
      %36 = vector.broadcast %cst_22 : f32 to vector<32x128xf32>
      %37 = arith.maximumf %35, %36 : vector<32x128xf32>
      %c4_23 = arith.constant 4 : index
      %c0_24 = arith.constant 0 : index
      %38 = vector.load %arg8[%c4_23, %c0_24] : memref<8x128xf32, #tpu.memory_space<vmem>>, vector<1x128xf32>
      %39 = vector.broadcast %38 : vector<1x128xf32> to vector<32x128xf32>
      %40 = arith.mulf %37, %39 : vector<32x128xf32>
      %c5_25 = arith.constant 5 : index
      %c0_26 = arith.constant 0 : index
      %41 = vector.load %arg8[%c5_25, %c0_26] : memref<8x128xf32, #tpu.memory_space<vmem>>, vector<1x128xf32>
      %42 = vector.broadcast %41 : vector<1x128xf32> to vector<32x128xf32>
      %43 = arith.addf %40, %42 : vector<32x128xf32>
      %c0_27 = arith.constant 0 : index
      %c0_28 = arith.constant 0 : index
      %44 = vector.load %arg4[%c0_27, %c0_28] : memref<128x128xf32, #tpu.memory_space<vmem>>, vector<128x128xf32>
      %cst_29 = arith.constant dense<0.000000e+00> : vector<32x128xf32>
      %45 = tpu.matmul %43, %44, %cst_29 {dimension_numbers = #tpu.dot_dimension_numbers<[1], [0], [0], [1], [0, 0, 1, 1], [], []>} : vector<32x128xf32>, vector<128x128xf32>, vector<32x128xf32> -> vector<32x128xf32>
      %46 = vector.broadcast %3 : vector<1x128xf32> to vector<32x128xf32>
      %47 = arith.addf %45, %46 : vector<32x128xf32>
      %cst_30 = arith.constant 0.000000e+00 : f32
      %48 = vector.broadcast %cst_30 : f32 to vector<32x128xf32>
      %49 = arith.maximumf %47, %48 : vector<32x128xf32>
      %c32_i32 = arith.constant 32 : i32
      %50 = arith.muli %arg1, %c32_i32 : i32
      %51 = tpu.iota {dimensions = array<i32: 0>} : vector<32x1xi32>
      %52 = vector.broadcast %50 : i32 to vector<32x1xi32>
      %53 = arith.addi %52, %51 : vector<32x1xi32>
      %c100_i32 = arith.constant 100 : i32
      %54 = vector.broadcast %c100_i32 : i32 to vector<32x1xi32>
      %55 = arith.cmpi slt, %53, %54 : vector<32x1xi32>
      %cst_31 = arith.constant 0.000000e+00 : f32
      %56 = vector.shape_cast %55 : vector<32x1xi1> to vector<32x1xi1>
      %57 = vector.broadcast %56 : vector<32x1xi1> to vector<32x128xi1>
      %58 = vector.broadcast %cst_31 : f32 to vector<32x128xf32>
      %59 = arith.select %57, %49, %58 : vector<32x128xi1>, vector<32x128xf32>
      %c2_32 = arith.constant 2 : index
      %c0_33 = arith.constant 0 : index
      %60 = vector.load %arg8[%c2_32, %c0_33] : memref<8x128xf32, #tpu.memory_space<vmem>>, vector<1x128xf32>
      %cst_34 = arith.constant dense<0.000000e+00> : vector<128xf32>
      %61 = vector.multi_reduction <add>, %59, %cst_34 [0] : vector<32x128xf32> to vector<128xf32>
      %62 = vector.shape_cast %61 : vector<128xf32> to vector<1x128xf32>
      %63 = arith.addf %60, %62 : vector<1x128xf32>
      %c2_35 = arith.constant 2 : index
      %c0_36 = arith.constant 0 : index
      %64 = vector.load %arg8[%c2_35, %c0_36] : memref<8x128xf32, #tpu.memory_space<vmem>>, vector<1x128xf32>
      tpu.vector_store %arg8[%c2_35, %c0_36], %63 {strides = array<i32>} : memref<8x128xf32, #tpu.memory_space<vmem>>, vector<1x128xf32>,
      %c3_37 = arith.constant 3 : index
      %c0_38 = arith.constant 0 : index
      %65 = vector.load %arg8[%c3_37, %c0_38] : memref<8x128xf32, #tpu.memory_space<vmem>>, vector<1x128xf32>
      %66 = arith.mulf %59, %59 : vector<32x128xf32>
      %cst_39 = arith.constant dense<0.000000e+00> : vector<128xf32>
      %67 = vector.multi_reduction <add>, %66, %cst_39 [0] : vector<32x128xf32> to vector<128xf32>
      %68 = vector.shape_cast %67 : vector<128xf32> to vector<1x128xf32>
      %69 = arith.addf %65, %68 : vector<1x128xf32>
      %c3_40 = arith.constant 3 : index
      %c0_41 = arith.constant 0 : index
      %70 = vector.load %arg8[%c3_40, %c0_41] : memref<8x128xf32, #tpu.memory_space<vmem>>, vector<1x128xf32>
      tpu.vector_store %arg8[%c3_40, %c0_41], %69 {strides = array<i32>} : memref<8x128xf32, #tpu.memory_space<vmem>>, vector<1x128xf32>,
    } else {
    }
    %c1_i32_14 = arith.constant 1 : i32
    %23 = arith.cmpi eq, %arg0, %c1_i32_14 : i32
    %c3_i32_15 = arith.constant 3 : i32
    %24 = arith.cmpi eq, %arg1, %c3_i32_15 : i32
    %25 = arith.andi %23, %24 : i1
    %26 = arith.extui %25 : i1 to i32
    %c0_i32_16 = arith.constant 0 : i32
    %27 = arith.cmpi ne, %26, %c0_i32_16 : i32
    scf.if %27 {
      %c2_18 = arith.constant 2 : index
      %c0_19 = arith.constant 0 : index
      %31 = vector.load %arg8[%c2_18, %c0_19] : memref<8x128xf32, #tpu.memory_space<vmem>>, vector<1x128xf32>
      %cst = arith.constant 0.00999999977 : f32
      %32 = vector.broadcast %cst : f32 to vector<1x128xf32>
      %33 = arith.mulf %31, %32 : vector<1x128xf32>
      %c3_20 = arith.constant 3 : index
      %c0_21 = arith.constant 0 : index
      %34 = vector.load %arg8[%c3_20, %c0_21] : memref<8x128xf32, #tpu.memory_space<vmem>>, vector<1x128xf32>
      %cst_22 = arith.constant 0.00999999977 : f32
      %35 = vector.broadcast %cst_22 : f32 to vector<1x128xf32>
      %36 = arith.mulf %34, %35 : vector<1x128xf32>
      %37 = arith.mulf %33, %33 : vector<1x128xf32>
      %38 = arith.subf %36, %37 : vector<1x128xf32>
      %cst_23 = arith.constant 0.000000e+00 : f32
      %39 = vector.broadcast %cst_23 : f32 to vector<1x128xf32>
      %40 = arith.maximumf %38, %39 : vector<1x128xf32>
      %cst_24 = arith.constant 9.99999974E-6 : f32
      %41 = vector.broadcast %cst_24 : f32 to vector<1x128xf32>
      %42 = arith.addf %40, %41 : vector<1x128xf32>
      %43 = math.rsqrt %42 : vector<1x128xf32>
      %44 = arith.mulf %4, %43 : vector<1x128xf32>
      %c6_25 = arith.constant 6 : index
      %c0_26 = arith.constant 0 : index
      %45 = vector.load %arg8[%c6_25, %c0_26] : memref<8x128xf32, #tpu.memory_space<vmem>>, vector<1x128xf32>
      tpu.vector_store %arg8[%c6_25, %c0_26], %44 {strides = array<i32>} : memref<8x128xf32, #tpu.memory_space<vmem>>, vector<1x128xf32>,
      %46 = arith.mulf %33, %44 : vector<1x128xf32>
      %47 = arith.subf %5, %46 : vector<1x128xf32>
      %c7 = arith.constant 7 : index
      %c0_27 = arith.constant 0 : index
      %48 = vector.load %arg8[%c7, %c0_27] : memref<8x128xf32, #tpu.memory_space<vmem>>, vector<1x128xf32>
      tpu.vector_store %arg8[%c7, %c0_27], %47 {strides = array<i32>} : memref<8x128xf32, #tpu.memory_space<vmem>>, vector<1x128xf32>,
    } else {
    }
    %c2_i32 = arith.constant 2 : i32
    %28 = arith.cmpi eq, %arg0, %c2_i32 : i32
    %29 = arith.extui %28 : i1 to i32
    %c0_i32_17 = arith.constant 0 : i32
    %30 = arith.cmpi ne, %29, %c0_i32_17 : i32
    scf.if %30 {
      %c0_18 = arith.constant 0 : index
      %c0_19 = arith.constant 0 : index
      %31 = vector.load %arg2[%c0_18, %c0_19] : memref<32x128xf32, #tpu.memory_space<vmem>>, vector<32x128xf32>
      %c0_20 = arith.constant 0 : index
      %c0_21 = arith.constant 0 : index
      %32 = vector.load %arg3[%c0_20, %c0_21] : memref<128x128xf32, #tpu.memory_space<vmem>>, vector<128x128xf32>
      %cst = arith.constant dense<0.000000e+00> : vector<32x128xf32>
      %33 = tpu.matmul %31, %32, %cst {dimension_numbers = #tpu.dot_dimension_numbers<[1], [0], [0], [1], [0, 0, 1, 1], [], []>} : vector<32x128xf32>, vector<128x128xf32>, vector<32x128xf32> -> vector<32x128xf32>
      %34 = vector.broadcast %0 : vector<1x128xf32> to vector<32x128xf32>
      %35 = arith.addf %33, %34 : vector<32x128xf32>
      %cst_22 = arith.constant 0.000000e+00 : f32
      %36 = vector.broadcast %cst_22 : f32 to vector<32x128xf32>
      %37 = arith.maximumf %35, %36 : vector<32x128xf32>
      %c4_23 = arith.constant 4 : index
      %c0_24 = arith.constant 0 : index
      %38 = vector.load %arg8[%c4_23, %c0_24] : memref<8x128xf32, #tpu.memory_space<vmem>>, vector<1x128xf32>
      %39 = vector.broadcast %38 : vector<1x128xf32> to vector<32x128xf32>
      %40 = arith.mulf %37, %39 : vector<32x128xf32>
      %c5_25 = arith.constant 5 : index
      %c0_26 = arith.constant 0 : index
      %41 = vector.load %arg8[%c5_25, %c0_26] : memref<8x128xf32, #tpu.memory_space<vmem>>, vector<1x128xf32>
      %42 = vector.broadcast %41 : vector<1x128xf32> to vector<32x128xf32>
      %43 = arith.addf %40, %42 : vector<32x128xf32>
      %c0_27 = arith.constant 0 : index
      %c0_28 = arith.constant 0 : index
      %44 = vector.load %arg4[%c0_27, %c0_28] : memref<128x128xf32, #tpu.memory_space<vmem>>, vector<128x128xf32>
      %cst_29 = arith.constant dense<0.000000e+00> : vector<32x128xf32>
      %45 = tpu.matmul %43, %44, %cst_29 {dimension_numbers = #tpu.dot_dimension_numbers<[1], [0], [0], [1], [0, 0, 1, 1], [], []>} : vector<32x128xf32>, vector<128x128xf32>, vector<32x128xf32> -> vector<32x128xf32>
      %46 = vector.broadcast %3 : vector<1x128xf32> to vector<32x128xf32>
      %47 = arith.addf %45, %46 : vector<32x128xf32>
      %cst_30 = arith.constant 0.000000e+00 : f32
      %48 = vector.broadcast %cst_30 : f32 to vector<32x128xf32>
      %49 = arith.maximumf %47, %48 : vector<32x128xf32>
      %c6_31 = arith.constant 6 : index
      %c0_32 = arith.constant 0 : index
      %50 = vector.load %arg8[%c6_31, %c0_32] : memref<8x128xf32, #tpu.memory_space<vmem>>, vector<1x128xf32>
      %51 = vector.broadcast %50 : vector<1x128xf32> to vector<32x128xf32>
      %52 = arith.mulf %49, %51 : vector<32x128xf32>
      %c7 = arith.constant 7 : index
      %c0_33 = arith.constant 0 : index
      %53 = vector.load %arg8[%c7, %c0_33] : memref<8x128xf32, #tpu.memory_space<vmem>>, vector<1x128xf32>
      %54 = vector.broadcast %53 : vector<1x128xf32> to vector<32x128xf32>
      %55 = arith.addf %52, %54 : vector<32x128xf32>
      %c0_34 = arith.constant 0 : index
      %c0_35 = arith.constant 0 : index
      %56 = vector.load %arg5[%c0_34, %c0_35] : memref<128x128xf32, #tpu.memory_space<vmem>>, vector<128x128xf32>
      %cst_36 = arith.constant dense<0.000000e+00> : vector<32x128xf32>
      %57 = tpu.matmul %55, %56, %cst_36 {dimension_numbers = #tpu.dot_dimension_numbers<[1], [0], [0], [1], [0, 0, 1, 1], [], []>} : vector<32x128xf32>, vector<128x128xf32>, vector<32x128xf32> -> vector<32x128xf32>
      %58 = vector.broadcast %6 : vector<1x128xf32> to vector<32x128xf32>
      %59 = arith.addf %57, %58 : vector<32x128xf32>
      %c0_37 = arith.constant 0 : index
      %c0_38 = arith.constant 0 : index
      %60 = vector.load %arg7[%c0_37, %c0_38] : memref<32x128xf32, #tpu.memory_space<vmem>>, vector<32x128xf32>
      tpu.vector_store %arg7[%c0_37, %c0_38], %59 {strides = array<i32>} : memref<32x128xf32, #tpu.memory_space<vmem>>, vector<32x128xf32>,
    } else {
    }
    return
  }
  func.func @transform_0(%arg0: i32, %arg1: i32) -> (i32, i32) {
    %c0_i32 = arith.constant 0 : i32
    %c0_i32_0 = arith.constant 0 : i32
    return %arg1, %c0_i32 : i32, i32
  }
  func.func @transform_1(%arg0: i32, %arg1: i32) -> (i32, i32) {
    %c0_i32 = arith.constant 0 : i32
    %c0_i32_0 = arith.constant 0 : i32
    %c0_i32_1 = arith.constant 0 : i32
    return %c0_i32, %c0_i32_0 : i32, i32
  }
  func.func @transform_2(%arg0: i32, %arg1: i32) -> (i32, i32) {
    %c0_i32 = arith.constant 0 : i32
    %c0_i32_0 = arith.constant 0 : i32
    %c0_i32_1 = arith.constant 0 : i32
    return %c0_i32, %c0_i32_0 : i32, i32
  }
  func.func @transform_3(%arg0: i32, %arg1: i32) -> (i32, i32) {
    %c0_i32 = arith.constant 0 : i32
    %c0_i32_0 = arith.constant 0 : i32
    %c0_i32_1 = arith.constant 0 : i32
    return %c0_i32, %c0_i32_0 : i32, i32
  }
  func.func @transform_4(%arg0: i32, %arg1: i32) -> (i32, i32) {
    %c0_i32 = arith.constant 0 : i32
    %c0_i32_0 = arith.constant 0 : i32
    %c0_i32_1 = arith.constant 0 : i32
    return %c0_i32, %c0_i32_0 : i32, i32
  }
  func.func @transform_5(%arg0: i32, %arg1: i32) -> (i32, i32) {
    %c0_i32 = arith.constant 0 : i32
    %c0_i32_0 = arith.constant 0 : i32
    return %arg1, %c0_i32 : i32, i32
  }
}

</mosaic_0001>

<bundles_post_ra>
// kernel: whatfaces_forward.1
= control target key start
LH: loop header
LB: loop body
LE: loop exit
PB: predicated region body
PF: predicated region fallthrough
CT: control target
= control target key end

     0   :  { %s1911_s18 = smov 0   ;;  %s1913_s19 = smov 0   ;;  %s2342_s0 = inlined_call_operand.vmem [shape: f32[128,128], index: 0, kind: input, shape index: {}]   ;;  %s2343_s1 = inlined_call_operand.vmem [shape: f32[128,128], index: 1, kind: input, shape index: {}]   ;;  %s2344_s2 = inlined_call_operand.vmem [shape: f32[128,128], index: 2, kind: input, shape index: {}]   ;;  %s2345_s3 = inlined_call_operand.vmem [shape: f32[128,128], index: 3, kind: input, shape index: {}]   ;;  %s2346_s4 = inlined_call_operand.vmem [shape: f32[8,128], index: 4, kind: input, shape index: {}]   ;;  %s2347_s5 = inlined_call_operand.vmem [shape: f32[128,128], index: 5, kind: output, shape index: {}]  }
   0x1   :  { %s1915_s20 = smov 0   ;;  %s1917_s21 = smov 0  }
   0x2   :  { %s1919_s22 = smov 0  }
   0x3 LB: > { %s24_s23 = sadd.s32 1, %s1870_s20  ;;  %s27_s24 = sadd.s32 1, %s1874_s21  ;;  %s1878_s22 = sphi %s1919_s22, %s15_s22   ;;  %s1874_s21 = sphi %s1917_s21, %s2351_s21   ;;  %s1870_s20 = sphi %s1915_s20, %s2350_s20   ;;  %s1866_s19 = sphi %s1913_s19, %s2349_s19   ;;  %s1862_s18 = sphi %s1911_s18, %s2348_s18  }
   0x4   : > { %p25_p0 = scmp.ge.s32.totalorder %s24_s23, 4  ;;  %p1204_p1 = scmp.ge.s32.totalorder %s1878_s22, 1 }
   0x5   : > { %p200_p2 = scmp.lt.s32.totalorder %s1878_s22, 13 }
   0x6   : > { %s2353_s23 = smov (%p25_p0, %s24_s23), 0  ;;  %s2355_s24 = smov (!%p25_p0, %s27_s24), %s1874_s21 }
   0x7   : > { %p201_p3 = pnand %p1204_p1, %p200_p2  ;;  %p29_p4 = scmp.ge.s32.totalorder %s2355_s24, 3 }
   0x8   : > { %s1205_s25 = sshll.u32 (!%p201_p3), %s1862_s18, 2  ;;  %v1949_v0 = vld [vmem:[%s2346_s4] sm:$0x1] (!%p201_p3)  ;;  %v1954_v1 = vld [vmem:[%s2346_s4 + $0x1] sm:$0x1] (!%p201_p3)  ;;  %p247_p5 = scmp.eq.s32.totalorder (!%p201_p3), %s1866_s19, 0 }
   0x9   : > { %s2357_s24 = smov (%p29_p4, %s2355_s24), 0  ;;  %204 = sbr.rel (%p201_p3) target bundleno = 1567 (0x61f), region = 40 }
   0xa   : > { %p229_p6 = scmp.lt.s32.totalorder (!%p201_p3), %s1205_s25, 15  ;;  %v1960_v2 = vld [vmem:[%s2346_s4 + $0x2] sm:$0x1] (!%p201_p3)  ;;  %v1965_v3 = vld [vmem:[%s2346_s4 + $0x3] sm:$0x1] (!%p201_p3)  ;;  %p248_p7 = scmp.eq.s32.totalorder (!%p201_p3), %s1862_s18, 0 }
   0xb   : > { %v1971_v4 = vld [vmem:[%s2346_s4 + $0x4] sm:$0x1] (!%p201_p3)  ;;  %v1976_v5 = vld [vmem:[%s2346_s4 + $0x5] sm:$0x1] (!%p201_p3)  ;;  %v1981_v6 = vld [vmem:[%s2346_s4 + $0x6] ss:$0 sm:$0xff] (!%p201_p3) }
   0xc   : > { %p249_p8 = pnand (!%p201_p3), %p248_p7, %p247_p5 }
  0x10   : > { %s2359_s25 = smov (!%p229_p6, %s1205_s25), 15  ;;  %252 = sbr.rel (%p249_p8) target bundleno = 23 (0x17), region = 44 }
  0x11   : > { %s1206_s15 = sshll.u32 %s2359_s25, 3  ;;  %v1880_v7 = vmov (!%p249_p8), 0.0  }
  0x12   : > { %s1988_s26 = scalar_lea.vmem %s2342_s0, %s1206_s15  ;;  %s1993_s29 = scalar_lea.vmem %s2347_s5, %s1206_s15  ;;  %253 = vst [vmem:[#allocation2] sm:$0xff] (!%p249_p8), %v1880_v7 }
  0x17 PF: > { %p1209_p9 = scmp.ne.s32.totalorder %s1866_s19, 0 }
  0x18   : > { %v261_v8 = vld [vmem:[%s2343_s1] sm:$0xff] (!%p1209_p9)  ;;  %v262_v9 = vld [vmem:[%s2343_s1 + $0x8] sm:$0xff] (!%p1209_p9)  ;;  %v263_v10 = vld [vmem:[%s2343_s1 + $0x10] sm:$0xff] (!%p1209_p9)  ;;  %v277_v36 = vlaneseq (!%p1209_p9)  ;;  %s1210_s30 = sshll.u32 (!%p1209_p9), %s1862_s18, 5 }
  0x19   : > { %256 = sbr.rel (%p1209_p9) target bundleno = 300 (0x12c), region = 48  ;;  %v1571_v11 = vpack.c.bf16 (!%p1209_p9), %v262_v9, %v261_v8  ;;  %v264_v12 = vld [vmem:[%s2343_s1 + $0x18] sm:$0xff] (!%p1209_p9)  ;;  %v265_v14 = vld [vmem:[%s2343_s1 + $0x20] sm:$0xff] (!%p1209_p9)  ;;  %v266_v15 = vld [vmem:[%s2343_s1 + $0x28] sm:$0xff] (!%p1209_p9)  ;;  %v376_v40 = vstv (!%p1209_p9), %s1210_s30 }
  0x1a   : > { %v1575_v13 = vpack.c.bf16 (!%p1209_p9), %v264_v12, %v263_v10  ;;  %v1579_v16 = vpack.c.bf16 (!%p1209_p9), %v266_v15, %v265_v14  ;;  %v257_v17 = vld [vmem:[%s1988_s26] sm:$0xff] (!%p1209_p9)  ;;  %v267_v18 = vld [vmem:[%s2343_s1 + $0x30] sm:$0xff] (!%p1209_p9)  ;;  %v268_v19 = vld [vmem:[%s2343_s1 + $0x38] sm:$0xff] (!%p1209_p9)  ;;  %v278_v37 = vshrl.u32 (!%p1209_p9), %v277_v36, 7 }
  0x1b   : > { %1572 = vmatprep.subr.bf16.mxu0 (!%p1209_p9), %v1571_v11  ;;  %1763 = vmatprep.subr.bf16.mxu1 (!%p1209_p9), %v1571_v11  ;;  %v259_v20 = vld [vmem:[%s1988_s26 + $0x10] sm:$0xff] (!%p1209_p9)  ;;  %v1583_v21 = vpack.c.bf16 (!%p1209_p9), %v268_v19, %v267_v18  ;;  %v269_v22 = vld [vmem:[%s2343_s1 + $0x40] sm:$0xff] (!%p1209_p9)  ;;  %v270_v23 = vld [vmem:[%s2343_s1 + $0x48] sm:$0xff] (!%p1209_p9) }
  0x1c   : > { %1574 = vmatpush3.bf16.msra.mxu0 (!%p1209_p9), %v1571_v11  ;;  %1771 = vmatpush3.bf16.msra.mxu1 (!%p1209_p9), %v1571_v11  ;;  %v1587_v24 = vpack.c.bf16 (!%p1209_p9), %v270_v23, %v269_v22  ;;  %v271_v25 = vld [vmem:[%s2343_s1 + $0x50] sm:$0xff] (!%p1209_p9)  ;;  %v272_v26 = vld [vmem:[%s2343_s1 + $0x58] sm:$0xff] (!%p1209_p9)  ;;  %v273_v28 = vld [vmem:[%s2343_s1 + $0x60] sm:$0xff] (!%p1209_p9)  ;;  %v279_v38 = vsub.s32 (!%p1209_p9), 0, %v278_v37  ;;  %v373_v39 = vadd.s32 (!%p1209_p9), 8, %v278_v37  ;;  %v374_v41 = vadd.s32 (!%p1209_p9), 16, %v278_v37 }
  0x1d   : > { %1576 = vmatprep.subr.bf16.mxu0 (!%p1209_p9), %v1575_v13  ;;  %1764 = vmatprep.subr.bf16.mxu1 (!%p1209_p9), %v1575_v13  ;;  %v1591_v27 = vpack.c.bf16 (!%p1209_p9), %v272_v26, %v271_v25  ;;  %v274_v29 = vld [vmem:[%s2343_s1 + $0x68] sm:$0xff] (!%p1209_p9)  ;;  %v275_v31 = vld [vmem:[%s2343_s1 + $0x70] sm:$0xff] (!%p1209_p9)  ;;  %v276_v32 = vld [vmem:[%s2343_s1 + $0x78] sm:$0xff] (!%p1209_p9)  ;;  %v375_v43 = vadd.s32 (!%p1209_p9), 24, %v278_v37  ;;  %v377_v45 = vadd.s32 (!%p1209_p9), %v376_v40, %v278_v37 }
  0x1e   : > { %1375 = vmatprep.mubr.f32.mxu0 (!%p1209_p9), %v257_v17  ;;  %1378 = vmatprep.mubr.f32.mxu1 (!%p1209_p9), %v259_v20  ;;  %v1595_v30 = vpack.c.bf16 (!%p1209_p9), %v274_v29, %v273_v28  ;;  %v1599_v33 = vpack.c.bf16 (!%p1209_p9), %v276_v32, %v275_v31  ;;  %v258_v34 = vld [vmem:[%s1988_s26 + $0x8] sm:$0xff] (!%p1209_p9)  ;;  %v260_v35 = vld [vmem:[%s1988_s26 + $0x18] sm:$0xff] (!%p1209_p9)  ;;  %v280_v42 = vrot.slane (!%p1209_p9), %v1949_v0, %v279_v38  ;;  %v397_v26 = vld [vmem:[#allocation2] sm:$0x1] (!%p1209_p9) }
  0x1f   : > { %v378_v44 = vadd.s32 (!%p1209_p9), %v376_v40, %v373_v39  ;;  %v379_v46 = vadd.s32 (!%p1209_p9), %v376_v40, %v374_v41  ;;  %v380_v52 = vadd.s32 (!%p1209_p9), %v376_v40, %v375_v43  ;;  %vm381_vm1 = vcmp.lt.s32.totalorder (!%p1209_p9), %v377_v45, 100  ;;  %v409_v29 = vld [vmem:[#allocation2 + $0x1] sm:$0x1] (!%p1209_p9) }
  0x20   : > { %1578 = vmatpush3.bf16.msra.mxu0 %v1575_v13  ;;  %1772 = vmatpush3.bf16.msra.mxu1 %v1575_v13 }
  0x21   : > { %1580 = vmatprep.subr.bf16.mxu0 %v1579_v16  ;;  %1765 = vmatprep.subr.bf16.mxu1 %v1579_v16  ;;  %vm382_vm0 = vcmp.lt.s32.totalorder %v378_v44, 100  ;;  %vm383_vm2 = vcmp.lt.s32.totalorder %v379_v46, 100  ;;  %vm384_vm3 = vcmp.lt.s32.totalorder %v380_v52, 100 }
  0x24   : > { %1582 = vmatpush3.bf16.msra.mxu0 %v1579_v16  ;;  %1773 = vmatpush3.bf16.msra.mxu1 %v1579_v16 }
  0x25   : > { %1584 = vmatprep.subr.bf16.mxu0 %v1583_v21  ;;  %1766 = vmatprep.subr.bf16.mxu1 %v1583_v21 }
  0x28   : > { %1586 = vmatpush3.bf16.msra.mxu0 %v1583_v21  ;;  %1774 = vmatpush3.bf16.msra.mxu1 %v1583_v21 }
  0x29   : > { %1588 = vmatprep.subr.bf16.mxu0 %v1587_v24  ;;  %1767 = vmatprep.subr.bf16.mxu1 %v1587_v24 }
  0x2c   : > { %1590 = vmatpush3.bf16.msra.mxu0 %v1587_v24  ;;  %1775 = vmatpush3.bf16.msra.mxu1 %v1587_v24 }
  0x2d   : > { %1592 = vmatprep.subr.bf16.mxu0 %v1591_v27  ;;  %1768 = vmatprep.subr.bf16.mxu1 %v1591_v27 }
  0x30   : > { %1594 = vmatpush3.bf16.msra.mxu0 %v1591_v27  ;;  %1776 = vmatpush3.bf16.msra.mxu1 %v1591_v27 }
  0x31   : > { %1596 = vmatprep.subr.bf16.mxu0 %v1595_v30  ;;  %1769 = vmatprep.subr.bf16.mxu1 %v1595_v30 }
  0x34   : > { %1598 = vmatpush3.bf16.msra.mxu0 %v1595_v30  ;;  %1777 = vmatpush3.bf16.msra.mxu1 %v1595_v30 }
  0x35   : > { %1600 = vmatprep.subr.bf16.mxu0 %v1599_v33  ;;  %1770 = vmatprep.subr.bf16.mxu1 %v1599_v33 }
  0x38   : > { %1602 = vmatpush3.bf16.msra.mxu0 %v1599_v33  ;;  %1778 = vmatpush3.bf16.msra.mxu1 %v1599_v33 }
  0x3b   : > { %1376 = vmatmul.mubr.f32.vlgmr.msra.gmra.mrb[0].mxu0 %v258_v34  ;;  %1379 = vmatmul.mubr.f32.vlgmr.msra.gmra.mrb[0].mxu1 %v260_v35 }
 0x10e   : > { %v1377_v47 = vpop.f32.mrb[0].mxu0  ;;  %v1380_v48 = vpop.f32.mrb[0].mxu1 }
 0x10f   : > { %v353_v49 = vadd.f32 %v1377_v47, %v280_v42  ;;  %v347_v50 = vpop.f32.mrb[1].mxu0  ;;  %v363_v51 = vadd.f32 %v1380_v48, %v280_v42  ;;  %v357_v53 = vpop.f32.mrb[1].mxu1 }
 0x110   : > { %v348_v54 = vadd.f32 %v347_v50, %v280_v42  ;;  %v358_v55 = vadd.f32 %v357_v53, %v280_v42 }
 0x111   : > { %v367_v56 = vmax.f32 %v353_v49, 0.0  ;;  %v369_v58 = vmax.f32 %v363_v51, 0.0 }
 0x112   : > { %v366_v57 = vmax.f32 %v348_v54, 0.0  ;;  %v368_v59 = vmax.f32 %v358_v55, 0.0 }
 0x113   : > { %v394_v60 = vsel %vm382_vm0, %v367_v56, 0.0  ;;  %v396_v10 = vsel %vm384_vm3, %v369_v58, 0.0 }
 0x114   : > { %v411_v61 = vmul.f32 %v394_v60, %v394_v60  ;;  %v393_v62 = vsel %vm381_vm1, %v366_v57, 0.0  ;;  %v395_v63 = vsel %vm383_vm2, %v368_v59, 0.0  ;;  %v413_v13 = vmul.f32 %v396_v10, %v396_v10 }
 0x115   : > { %v398_v7 = vadd.f32 %v394_v60, %v393_v62  ;;  %v410_v8 = vmul.f32 %v393_v62, %v393_v62  ;;  %v412_v9 = vmul.f32 %v395_v63, %v395_v63 }
 0x117   : > { %v414_v11 = vadd.f32 %v411_v61, %v410_v8  ;;  %v399_v12 = vadd.f32 %v398_v7, %v395_v63 }
 0x119   : > { %v400_v14 = vadd.f32 %v399_v12, %v396_v10  ;;  %v415_v15 = vadd.f32 %v414_v11, %v412_v9 }
 0x11b   : > { %v401_v16 = vrot.slane %v400_v14, 4  ;;  %v416_v17 = vadd.f32 %v415_v15, %v413_v13 }
 0x11d   : > { %v402_v18 = vadd.f32 %v401_v16, %v400_v14  ;;  %v417_v19 = vrot.slane %v416_v17, 4 }
 0x11f   : > { %v403_v20 = vrot.slane %v402_v18, 2  ;;  %v418_v21 = vadd.f32 %v417_v19, %v416_v17 }
 0x121   : > { %v404_v22 = vadd.f32 %v403_v20, %v402_v18  ;;  %v419_v23 = vrot.slane %v418_v21, 2 }
 0x123   : > { %v405_v24 = vrot.slane %v404_v22, 1  ;;  %v420_v25 = vadd.f32 %v419_v23, %v418_v21 }
 0x125   : > { %v406_v27 = vadd.f32 %v405_v24, %v404_v22  ;;  %v421_v28 = vrot.slane %v420_v25, 1 }
 0x127   : > { %v407_v30 = vadd.f32 %v406_v27, %v397_v26  ;;  %v422_v31 = vadd.f32 %v421_v28, %v420_v25 }
 0x129   : > { %408 = vst [vmem:[#allocation2] sm:$0x1] %v407_v30  ;;  %v423_v32 = vadd.f32 %v422_v31, %v409_v29 }
 0x12b   : > { %424 = vst [vmem:[#allocation2 + $0x1] sm:$0x1] %v423_v32 }
 0x12c PF: > { %p425_p10 = scmp.eq.s32.totalorder %s1862_s18, 3 }
 0x12e   : > { %p426_p11 = pnand %p425_p10, %p247_p5 }
 0x130   : > { %429 = sbr.rel (%p426_p11) target bundleno = 333 (0x14d), region = 52  ;;  %v430_v33 = vld [vmem:[#allocation2] sm:$0x1] (!%p426_p11) }
 0x131   : > { %v431_v35 = vmul.f32 (!%p426_p11), 0.01, %v430_v33 }
 0x132   : > { %v432_v34 = vld [vmem:[#allocation2 + $0x1] sm:$0x1] (!%p426_p11) }
 0x133   : > { %v433_v36 = vmul.f32 (!%p426_p11), 0.01, %v432_v34  ;;  %v434_v37 = vmul.f32 (!%p426_p11), %v431_v35, %v431_v35 }
 0x135   : > { %v435_v38 = vsub.f32 (!%p426_p11), %v433_v36, %v434_v37 }
 0x137   : > { %v436_v39 = vmax.f32 %v435_v38, 0.0 }
 0x139   : > { %v437_v40 = vadd.f32 1e-05, %v436_v39 }
 0x13b   : > { %1836 = vrsqrt.f32 %v437_v40 }
 0x145   : > { %v1837_v41 = vpop.eup %1836 }
 0x146   : > { %v439_v42 = vmul.f32 %v1837_v41, %v1954_v1 }
 0x148   : > { %440 = vst [vmem:[#allocation2 + $0x4] sm:$0x1] %v439_v42  ;;  %v441_v43 = vmul.f32 %v439_v42, %v431_v35 }
 0x14a   : > { %v442_v44 = vsub.f32 %v1960_v2, %v441_v43 }
 0x14c   : > { %443 = vst [vmem:[#allocation2 + $0x5] sm:$0x1] %v442_v44 }
 0x14d PF: > { %p444_p12 = scmp.eq.s32.totalorder %s1866_s19, 1  ;;  %p1211_p13 = scmp.ne.s32.totalorder %s1866_s19, 1 }
 0x14e   : > { %v452_v45 = vld [vmem:[%s2343_s1] sm:$0xff] (!%p1211_p13)  ;;  %v453_v1 = vld [vmem:[%s2343_s1 + $0x8] sm:$0xff] (!%p1211_p13)  ;;  %v454_v2 = vld [vmem:[%s2343_s1 + $0x10] sm:$0xff] (!%p1211_p13)  ;;  %v468_v38 = vlaneseq (!%p1211_p13)  ;;  %s1214_s6 = sshll.u32 (!%p1211_p13), %s1862_s18, 5 }
 0x14f   : > { %447 = sbr.rel (%p1211_p13) target bundleno = 834 (0x342), region = 56  ;;  %v1603_v46 = vpack.c.bf16 (!%p1211_p13), %v453_v1, %v452_v45  ;;  %v455_v47 = vld [vmem:[%s2343_s1 + $0x18] sm:$0xff] (!%p1211_p13)  ;;  %v456_v49 = vld [vmem:[%s2343_s1 + $0x20] sm:$0xff] (!%p1211_p13)  ;;  %v457_v50 = vld [vmem:[%s2343_s1 + $0x28] sm:$0xff] (!%p1211_p13) }
 0x150   : > { %v1607_v48 = vpack.c.bf16 (!%p1211_p13), %v455_v47, %v454_v2  ;;  %v1611_v51 = vpack.c.bf16 (!%p1211_p13), %v457_v50, %v456_v49  ;;  %v448_v52 = vld [vmem:[%s1988_s26] sm:$0xff] (!%p1211_p13)  ;;  %v458_v53 = vld [vmem:[%s2343_s1 + $0x30] sm:$0xff] (!%p1211_p13)  ;;  %v459_v54 = vld [vmem:[%s2343_s1 + $0x38] sm:$0xff] (!%p1211_p13)  ;;  %v469_v39 = vshrl.u32 (!%p1211_p13), %v468_v38, 7 }
 0x151   : > { %1604 = vmatprep.subr.bf16.mxu0 (!%p1211_p13), %v1603_v46  ;;  %1413 = vmatprep.mubr.f32.mxu0 (!%p1211_p13), %v448_v52  ;;  %v579_v55 = vld [vmem:[%s2344_s2] sm:$0xff] (!%p1211_p13)  ;;  %v580_v56 = vld [vmem:[%s2344_s2 + $0x8] sm:$0xff] (!%p1211_p13)  ;;  %v581_v57 = vld [vmem:[%s2344_s2 + $0x10] sm:$0xff] (!%p1211_p13)  ;;  %v1615_v61 = vpack.c.bf16 (!%p1211_p13), %v459_v54, %v458_v53 }
 0x152   : > { %1606 = vmatpush3.bf16.msra.mxu0 (!%p1211_p13), %v1603_v46  ;;  %v582_v58 = vld [vmem:[%s2344_s2 + $0x18] sm:$0xff] (!%p1211_p13)  ;;  %v1635_v59 = vpack.c.bf16 (!%p1211_p13), %v580_v56, %v579_v55  ;;  %v583_v62 = vld [vmem:[%s2344_s2 + $0x20] sm:$0xff] (!%p1211_p13)  ;;  %v584_v63 = vld [vmem:[%s2344_s2 + $0x28] sm:$0xff] (!%p1211_p13)  ;;  %v470_v40 = vsub.s32 (!%p1211_p13), 0, %v469_v39 }
 0x153   : > { %1608 = vmatprep.subr.bf16.mxu0 (!%p1211_p13), %v1607_v48  ;;  %v1639_v60 = vpack.c.bf16 (!%p1211_p13), %v582_v58, %v581_v57  ;;  %v460_v7 = vld [vmem:[%s2343_s1 + $0x40] sm:$0xff] (!%p1211_p13)  ;;  %v461_v8 = vld [vmem:[%s2343_s1 + $0x48] sm:$0xff] (!%p1211_p13)  ;;  %v1643_v9 = vpack.c.bf16 (!%p1211_p13), %v584_v63, %v583_v62  ;;  %v585_v11 = vld [vmem:[%s2344_s2 + $0x30] sm:$0xff] (!%p1211_p13)  ;;  %v691_v62 = vadd.s32 (!%p1211_p13), 8, %v469_v39  ;;  %v694_v63 = vstv (!%p1211_p13), %s1214_s6 }
 0x154   : > { %1636 = vmatprep.subr.bf16.mxu1 (!%p1211_p13), %v1635_v59  ;;  %v1619_v10 = vpack.c.bf16 (!%p1211_p13), %v461_v8, %v460_v7  ;;  %v586_v12 = vld [vmem:[%s2344_s2 + $0x38] sm:$0xff] (!%p1211_p13)  ;;  %v462_v13 = vld [vmem:[%s2343_s1 + $0x50] sm:$0xff] (!%p1211_p13)  ;;  %v587_v17 = vld [vmem:[%s2344_s2 + $0x40] sm:$0xff] (!%p1211_p13)  ;;  %v471_v41 = vrot.slane (!%p1211_p13), %v1949_v0, %v470_v40  ;;  %v598_v7 = vrot.slane (!%p1211_p13), %v1965_v3, %v470_v40 }
 0x155   : > { %1638 = vmatpush3.bf16.msra.mxu1 (!%p1211_p13), %v1635_v59  ;;  %v463_v14 = vld [vmem:[%s2343_s1 + $0x58] sm:$0xff] (!%p1211_p13)  ;;  %v1647_v15 = vpack.c.bf16 (!%p1211_p13), %v586_v12, %v585_v11  ;;  %v588_v18 = vld [vmem:[%s2344_s2 + $0x48] sm:$0xff] (!%p1211_p13)  ;;  %v464_v19 = vld [vmem:[%s2343_s1 + $0x60] sm:$0xff] (!%p1211_p13)  ;;  %v696_v8 = vadd.s32 (!%p1211_p13), %v694_v63, %v691_v62  ;;  %v692_v11 = vadd.s32 (!%p1211_p13), 16, %v469_v39 }
 0x156   : > { %1610 = vmatpush3.bf16.msra.mxu0 %v1607_v48  ;;  %1640 = vmatprep.subr.bf16.mxu1 %v1639_v60  ;;  %v1623_v16 = vpack.c.bf16 %v463_v14, %v462_v13  ;;  %v465_v20 = vld [vmem:[%s2343_s1 + $0x68] sm:$0xff]  ;;  %v1651_v21 = vpack.c.bf16 %v588_v18, %v587_v17  ;;  %v589_v23 = vld [vmem:[%s2344_s2 + $0x50] sm:$0xff]  ;;  %v590_v24 = vld [vmem:[%s2344_s2 + $0x58] sm:$0xff] }
 0x157   : > { %1612 = vmatprep.subr.bf16.mxu0 %v1611_v51  ;;  %v1627_v22 = vpack.c.bf16 %v465_v20, %v464_v19  ;;  %v466_v25 = vld [vmem:[%s2343_s1 + $0x70] sm:$0xff]  ;;  %v467_v26 = vld [vmem:[%s2343_s1 + $0x78] sm:$0xff]  ;;  %v1655_v27 = vpack.c.bf16 %v590_v24, %v589_v23  ;;  %v449_v29 = vld [vmem:[%s1988_s26 + $0x8] sm:$0xff]  ;;  %vm700_vm4 = vcmp.lt.s32.totalorder %v696_v8, 100  ;;  %v697_v18 = vadd.s32 %v694_v63, %v692_v11 }
 0x158   : > { %v1631_v28 = vpack.c.bf16 %v467_v26, %v466_v25  ;;  %v450_v30 = vld [vmem:[%s1988_s26 + $0x10] sm:$0xff]  ;;  %v451_v31 = vld [vmem:[%s1988_s26 + $0x18] sm:$0xff]  ;;  %v591_v32 = vld [vmem:[%s2344_s2 + $0x60] sm:$0xff] }
 0x159   : > { %1642 = vmatpush3.bf16.msra.mxu1 %v1639_v60  ;;  %v592_v33 = vld [vmem:[%s2344_s2 + $0x68] sm:$0xff]  ;;  %v593_v35 = vld [vmem:[%s2344_s2 + $0x70] sm:$0xff]  ;;  %v594_v36 = vld [vmem:[%s2344_s2 + $0x78] sm:$0xff]  ;;  %vm701_vm7 = vcmp.lt.s32.totalorder %v697_v18, 100 }
 0x15a   : > { %1614 = vmatpush3.bf16.msra.mxu0 %v1611_v51  ;;  %1644 = vmatprep.subr.bf16.mxu1 %v1643_v9  ;;  %v1659_v34 = vpack.c.bf16 %v592_v33, %v591_v32  ;;  %v1663_v37 = vpack.c.bf16 %v594_v36, %v593_v35  ;;  %v1212_v45 = vld [vmem:[#allocation2 + $0x4] ss:$0 sm:$0xff]  ;;  %v1213_v51 = vld [vmem:[#allocation2 + $0x5] ss:$0 sm:$0xff] }
 0x15b   : > { %1616 = vmatprep.subr.bf16.mxu0 %v1615_v61 }
 0x15d   : > { %1646 = vmatpush3.bf16.msra.mxu1 %v1643_v9  ;;  %v693_v9 = vadd.s32 24, %v469_v39 }
 0x15e   : > { %1618 = vmatpush3.bf16.msra.mxu0 %v1615_v61  ;;  %1648 = vmatprep.subr.bf16.mxu1 %v1647_v15 }
 0x15f   : > { %1620 = vmatprep.subr.bf16.mxu0 %v1619_v10 }
 0x161   : > { %1650 = vmatpush3.bf16.msra.mxu1 %v1647_v15 }
 0x162   : > { %1622 = vmatpush3.bf16.msra.mxu0 %v1619_v10  ;;  %1652 = vmatprep.subr.bf16.mxu1 %v1651_v21  ;;  %v695_v10 = vadd.s32 %v694_v63, %v469_v39 }
 0x163   : > { %1624 = vmatprep.subr.bf16.mxu0 %v1623_v16 }
 0x164   : > { %vm699_vm5 = vcmp.lt.s32.totalorder %v695_v10, 100 }
 0x165   : > { %1654 = vmatpush3.bf16.msra.mxu1 %v1651_v21 }
 0x166   : > { %1626 = vmatpush3.bf16.msra.mxu0 %v1623_v16  ;;  %1656 = vmatprep.subr.bf16.mxu1 %v1655_v27  ;;  %v698_v16 = vadd.s32 %v694_v63, %v693_v9 }
 0x167   : > { %1628 = vmatprep.subr.bf16.mxu0 %v1627_v22 }
 0x168   : > { %vm702_vm6 = vcmp.lt.s32.totalorder %v698_v16, 100 }
 0x169   : > { %1658 = vmatpush3.bf16.msra.mxu1 %v1655_v27 }
 0x16a   : > { %1630 = vmatpush3.bf16.msra.mxu0 %v1627_v22  ;;  %1660 = vmatprep.subr.bf16.mxu1 %v1659_v34 }
 0x16b   : > { %1632 = vmatprep.subr.bf16.mxu0 %v1631_v28 }
 0x16d   : > { %1662 = vmatpush3.bf16.msra.mxu1 %v1659_v34 }
 0x16e   : > { %1634 = vmatpush3.bf16.msra.mxu0 %v1631_v28  ;;  %1664 = vmatprep.subr.bf16.mxu1 %v1663_v37 }
 0x171   : > { %1414 = vmatmul.mubr.f32.vlgmr.msra.gmra.mrb[0].mxu0 %v449_v29  ;;  %1666 = vmatpush3.bf16.msra.mxu1 %v1663_v37 }
 0x172   : > { %1416 = vmatprep.mubr.f32.mxu0 %v450_v30 }
 0x175   : > { %1417 = vmatmul.mubr.f32.gmra.mrb[2].mxu0 %v451_v31 }
 0x244   : > { %v1415_v42 = vpop.f32.mrb[0].mxu0 }
 0x245   : > { %v544_v43 = vadd.f32 %v1415_v42, %v471_v41  ;;  %v538_v44 = vpop.f32.mrb[1].mxu0 }
 0x246   : > { %v539_v1 = vadd.f32 %v538_v44, %v471_v41 }
 0x247   : > { %v558_v2 = vmax.f32 %v544_v43, 0.0 }
 0x248   : > { %v557_v46 = vmax.f32 %v539_v1, 0.0  ;;  %v1418_v47 = vpop.f32.mrb[2].mxu0 }
 0x249   : > { %v567_v48 = vmul.f32 %v1212_v45, %v558_v2  ;;  %v554_v49 = vadd.f32 %v1418_v47, %v471_v41  ;;  %v548_v50 = vpop.f32.mrb[3].mxu0  ;;  %v715_v47 = vld [vmem:[#allocation2 + $0x2] sm:$0x1] }
 0x24a   : > { %v549_v52 = vadd.f32 %v548_v50, %v471_v41  ;;  %v566_v53 = vmul.f32 %v1212_v45, %v557_v46  ;;  %v727_v50 = vld [vmem:[#allocation2 + $0x3] sm:$0x1] }
 0x24b   : > { %v560_v54 = vmax.f32 %v554_v49, 0.0  ;;  %v576_v58 = vadd.f32 %v1213_v51, %v567_v48 }
 0x24c   : > { %v559_v55 = vmax.f32 %v549_v52, 0.0  ;;  %v575_v56 = vadd.f32 %v1213_v51, %v566_v53 }
 0x24d   : > { %v569_v57 = vmul.f32 %v1212_v45, %v560_v54 }
 0x24e   : > { %v568_v59 = vmul.f32 %v1212_v45, %v559_v55  ;;  %1451 = vmatprep.mubr.f32.mxu1 %v575_v56 }
 0x24f   : > { %1452 = vmatmul.mubr.f32.vlgmr.msra.gmra.mrb[0].mxu1 %v576_v58  ;;  %v578_v61 = vadd.f32 %v1213_v51, %v569_v57 }
 0x250   : > { %v577_v60 = vadd.f32 %v1213_v51, %v568_v59 }
 0x252   : > { %1454 = vmatprep.mubr.f32.mxu1 %v577_v60 }
 0x253   : > { %1455 = vmatmul.mubr.f32.gmra.mrb[2].mxu1 %v578_v61 }
 0x322   : > { %v1453_v12 = vpop.f32.mrb[0].mxu1 }
 0x323   : > { %v671_v13 = vadd.f32 %v1453_v12, %v598_v7  ;;  %v665_v14 = vpop.f32.mrb[1].mxu1 }
 0x324   : > { %v666_v15 = vadd.f32 %v665_v14, %v598_v7 }
 0x325   : > { %v685_v17 = vmax.f32 %v671_v13, 0.0 }
 0x326   : > { %v684_v19 = vmax.f32 %v666_v15, 0.0  ;;  %v1456_v20 = vpop.f32.mrb[2].mxu1 }
 0x327   : > { %v712_v21 = vsel %vm700_vm4, %v685_v17, 0.0  ;;  %v681_v22 = vadd.f32 %v1456_v20, %v598_v7  ;;  %v675_v23 = vpop.f32.mrb[3].mxu1 }
 0x328   : > { %v729_v24 = vmul.f32 %v712_v21, %v712_v21  ;;  %v711_v25 = vsel %vm699_vm5, %v684_v19, 0.0  ;;  %v676_v26 = vadd.f32 %v675_v23, %v598_v7 }
 0x329   : > { %v716_v27 = vadd.f32 %v712_v21, %v711_v25  ;;  %v728_v28 = vmul.f32 %v711_v25, %v711_v25  ;;  %v687_v29 = vmax.f32 %v681_v22, 0.0 }
 0x32a   : > { %v686_v30 = vmax.f32 %v676_v26, 0.0 }
 0x32b   : > { %v732_v31 = vadd.f32 %v729_v24, %v728_v28  ;;  %v714_v32 = vsel %vm702_vm6, %v687_v29, 0.0 }
 0x32c   : > { %v713_v33 = vsel %vm701_vm7, %v686_v30, 0.0  ;;  %v731_v36 = vmul.f32 %v714_v32, %v714_v32 }
 0x32d   : > { %v717_v34 = vadd.f32 %v716_v27, %v713_v33  ;;  %v730_v35 = vmul.f32 %v713_v33, %v713_v33 }
 0x32f   : > { %v718_v37 = vadd.f32 %v717_v34, %v714_v32  ;;  %v733_v38 = vadd.f32 %v732_v31, %v730_v35 }
 0x331   : > { %v719_v39 = vrot.slane %v718_v37, 4  ;;  %v734_v40 = vadd.f32 %v733_v38, %v731_v36 }
 0x333   : > { %v720_v41 = vadd.f32 %v719_v39, %v718_v37  ;;  %v735_v42 = vrot.slane %v734_v40, 4 }
 0x335   : > { %v721_v43 = vrot.slane %v720_v41, 2  ;;  %v736_v44 = vadd.f32 %v735_v42, %v734_v40 }
 0x337   : > { %v722_v45 = vadd.f32 %v721_v43, %v720_v41  ;;  %v737_v1 = vrot.slane %v736_v44, 2 }
 0x339   : > { %v723_v2 = vrot.slane %v722_v45, 1  ;;  %v738_v46 = vadd.f32 %v737_v1, %v736_v44 }
 0x33b   : > { %v724_v48 = vadd.f32 %v723_v2, %v722_v45  ;;  %v739_v49 = vrot.slane %v738_v46, 1 }
 0x33d   : > { %v725_v51 = vadd.f32 %v724_v48, %v715_v47  ;;  %v740_v52 = vadd.f32 %v739_v49, %v738_v46 }
 0x33f   : > { %726 = vst [vmem:[#allocation2 + $0x2] sm:$0x1] %v725_v51  ;;  %v741_v53 = vadd.f32 %v740_v52, %v727_v50 }
 0x341   : > { %742 = vst [vmem:[#allocation2 + $0x3] sm:$0x1] %v741_v53 }
 0x342 PF: > { %p743_p0 = pnand %p444_p12, %p425_p10 }
 0x344   : > { %746 = sbr.rel (%p743_p0) target bundleno = 867 (0x363), region = 60 }
 0x346   : > { %v747_v54 = vld [vmem:[#allocation2 + $0x2] sm:$0x1] (!%p743_p0) }
 0x347   : > { %v748_v56 = vmul.f32 (!%p743_p0), 0.01, %v747_v54 }
 0x348   : > { %v749_v55 = vld [vmem:[#allocation2 + $0x3] sm:$0x1] (!%p743_p0) }
 0x349   : > { %v750_v57 = vmul.f32 (!%p743_p0), 0.01, %v749_v55  ;;  %v751_v58 = vmul.f32 (!%p743_p0), %v748_v56, %v748_v56 }
 0x34b   : > { %v752_v59 = vsub.f32 %v750_v57, %v751_v58 }
 0x34d   : > { %v753_v60 = vmax.f32 %v752_v59, 0.0 }
 0x34f   : > { %v754_v61 = vadd.f32 1e-05, %v753_v60 }
 0x351   : > { %1838 = vrsqrt.f32 %v754_v61 }
 0x35b   : > { %v1839_v62 = vpop.eup %1838 }
 0x35c   : > { %v756_v63 = vmul.f32 %v1839_v62, %v1971_v4 }
 0x35e   : > { %757 = vst [vmem:[#allocation2 + $0x6] sm:$0x1] %v756_v63  ;;  %v758_v7 = vmul.f32 %v756_v63, %v748_v56 }
 0x360   : > { %v759_v8 = vsub.f32 %v1976_v5, %v758_v7 }
 0x362   : > { %760 = vst [vmem:[#allocation2 + $0x7] sm:$0x1] %v759_v8 }
 0x363 PF: > { %p1215_p1 = scmp.ne.s32.totalorder %s1866_s19, 2 }
 0x364   : > { %v769_v9 = vld [vmem:[%s2343_s1] sm:$0xff] (!%p1215_p1)  ;;  %v770_v10 = vld [vmem:[%s2343_s1 + $0x8] sm:$0xff] (!%p1215_p1)  ;;  %v771_v4 = vld [vmem:[%s2343_s1 + $0x10] sm:$0xff] (!%p1215_p1) }
 0x365   : > { %764 = sbr.rel (%p1215_p1) target bundleno = 1567 (0x61f), region = 64  ;;  %v1667_v11 = vpack.c.bf16 (!%p1215_p1), %v770_v10, %v769_v9  ;;  %v772_v5 = vld [vmem:[%s2343_s1 + $0x18] sm:$0xff] (!%p1215_p1)  ;;  %v773_v13 = vld [vmem:[%s2343_s1 + $0x20] sm:$0xff] (!%p1215_p1)  ;;  %v774_v14 = vld [vmem:[%s2343_s1 + $0x28] sm:$0xff] (!%p1215_p1) }
 0x366   : > { %v1671_v12 = vpack.c.bf16 (!%p1215_p1), %v772_v5, %v771_v4  ;;  %v1675_v15 = vpack.c.bf16 (!%p1215_p1), %v774_v14, %v773_v13  ;;  %v765_v16 = vld [vmem:[%s1988_s26] sm:$0xff] (!%p1215_p1)  ;;  %v775_v17 = vld [vmem:[%s2343_s1 + $0x30] sm:$0xff] (!%p1215_p1)  ;;  %v776_v18 = vld [vmem:[%s2343_s1 + $0x38] sm:$0xff] (!%p1215_p1) }
 0x367   : > { %1668 = vmatprep.subr.bf16.mxu0 (!%p1215_p1), %v1667_v11  ;;  %1489 = vmatprep.mubr.f32.mxu0 (!%p1215_p1), %v765_v16  ;;  %v896_v19 = vld [vmem:[%s2344_s2] sm:$0xff] (!%p1215_p1)  ;;  %v897_v20 = vld [vmem:[%s2344_s2 + $0x8] sm:$0xff] (!%p1215_p1)  ;;  %v898_v21 = vld [vmem:[%s2344_s2 + $0x10] sm:$0xff] (!%p1215_p1)  ;;  %v1679_v25 = vpack.c.bf16 (!%p1215_p1), %v776_v18, %v775_v17  ;;  %v785_v16 = vlaneseq (!%p1215_p1) }
 0x368   : > { %1670 = vmatpush3.bf16.msra.mxu0 (!%p1215_p1), %v1667_v11  ;;  %v899_v22 = vld [vmem:[%s2344_s2 + $0x18] sm:$0xff] (!%p1215_p1)  ;;  %v1699_v23 = vpack.c.bf16 (!%p1215_p1), %v897_v20, %v896_v19  ;;  %v900_v26 = vld [vmem:[%s2344_s2 + $0x20] sm:$0xff] (!%p1215_p1)  ;;  %v901_v27 = vld [vmem:[%s2344_s2 + $0x28] sm:$0xff] (!%p1215_p1) }
 0x369   : > { %1672 = vmatprep.subr.bf16.mxu0 (!%p1215_p1), %v1671_v12  ;;  %v1703_v24 = vpack.c.bf16 (!%p1215_p1), %v899_v22, %v898_v21  ;;  %v777_v28 = vld [vmem:[%s2343_s1 + $0x40] sm:$0xff] (!%p1215_p1)  ;;  %v778_v29 = vld [vmem:[%s2343_s1 + $0x48] sm:$0xff] (!%p1215_p1)  ;;  %v1707_v30 = vpack.c.bf16 (!%p1215_p1), %v901_v27, %v900_v26  ;;  %v902_v32 = vld [vmem:[%s2344_s2 + $0x30] sm:$0xff] (!%p1215_p1)  ;;  %v786_v17 = vshrl.u32 (!%p1215_p1), %v785_v16, 7 }
 0x36a   : > { %1700 = vmatprep.subr.bf16.mxu1 (!%p1215_p1), %v1699_v23  ;;  %v1683_v31 = vpack.c.bf16 (!%p1215_p1), %v778_v29, %v777_v28  ;;  %v903_v33 = vld [vmem:[%s2344_s2 + $0x38] sm:$0xff] (!%p1215_p1)  ;;  %v779_v34 = vld [vmem:[%s2343_s1 + $0x50] sm:$0xff] (!%p1215_p1)  ;;  %v904_v38 = vld [vmem:[%s2344_s2 + $0x40] sm:$0xff] (!%p1215_p1) }
 0x36b   : > { %1702 = vmatpush3.bf16.msra.mxu1 (!%p1215_p1), %v1699_v23  ;;  %v780_v35 = vld [vmem:[%s2343_s1 + $0x58] sm:$0xff] (!%p1215_p1)  ;;  %v1711_v36 = vpack.c.bf16 (!%p1215_p1), %v903_v33, %v902_v32  ;;  %v905_v39 = vld [vmem:[%s2344_s2 + $0x48] sm:$0xff] (!%p1215_p1)  ;;  %v781_v40 = vld [vmem:[%s2343_s1 + $0x60] sm:$0xff] (!%p1215_p1)  ;;  %v787_v18 = vsub.s32 (!%p1215_p1), 0, %v786_v17 }
 0x36c   : > { %1674 = vmatpush3.bf16.msra.mxu0 %v1671_v12  ;;  %1704 = vmatprep.subr.bf16.mxu1 %v1703_v24  ;;  %v1687_v37 = vpack.c.bf16 %v780_v35, %v779_v34  ;;  %v782_v41 = vld [vmem:[%s2343_s1 + $0x68] sm:$0xff]  ;;  %v1715_v42 = vpack.c.bf16 %v905_v39, %v904_v38  ;;  %v906_v44 = vld [vmem:[%s2344_s2 + $0x50] sm:$0xff]  ;;  %v907_v45 = vld [vmem:[%s2344_s2 + $0x58] sm:$0xff] }
 0x36d   : > { %1676 = vmatprep.subr.bf16.mxu0 %v1675_v15  ;;  %v1691_v43 = vpack.c.bf16 %v782_v41, %v781_v40  ;;  %v783_v1 = vld [vmem:[%s2343_s1 + $0x70] sm:$0xff]  ;;  %v784_v2 = vld [vmem:[%s2343_s1 + $0x78] sm:$0xff]  ;;  %v1719_v46 = vpack.c.bf16 %v907_v45, %v906_v44  ;;  %v766_v48 = vld [vmem:[%s1988_s26 + $0x8] sm:$0xff]  ;;  %v788_v19 = vrot.slane %v1949_v0, %v787_v18 }
 0x36e   : > { %v1695_v47 = vpack.c.bf16 %v784_v2, %v783_v1  ;;  %v767_v49 = vld [vmem:[%s1988_s26 + $0x10] sm:$0xff]  ;;  %v768_v50 = vld [vmem:[%s1988_s26 + $0x18] sm:$0xff]  ;;  %v908_v51 = vld [vmem:[%s2344_s2 + $0x60] sm:$0xff]  ;;  %v915_v2 = vrot.slane %v1965_v3, %v787_v18 }
 0x36f   : > { %1706 = vmatpush3.bf16.msra.mxu1 %v1703_v24  ;;  %v909_v52 = vld [vmem:[%s2344_s2 + $0x68] sm:$0xff]  ;;  %v910_v54 = vld [vmem:[%s2344_s2 + $0x70] sm:$0xff]  ;;  %v911_v55 = vld [vmem:[%s2344_s2 + $0x78] sm:$0xff] }
 0x370   : > { %1678 = vmatpush3.bf16.msra.mxu0 %v1675_v15  ;;  %1708 = vmatprep.subr.bf16.mxu1 %v1707_v30  ;;  %v1723_v53 = vpack.c.bf16 %v909_v52, %v908_v51  ;;  %v1727_v56 = vpack.c.bf16 %v911_v55, %v910_v54  ;;  %v1023_v57 = vld [vmem:[%s2345_s3] sm:$0xff]  ;;  %v1024_v58 = vld [vmem:[%s2345_s3 + $0x8] sm:$0xff]  ;;  %v1025_v59 = vld [vmem:[%s2345_s3 + $0x10] sm:$0xff] }
 0x371   : > { %1680 = vmatprep.subr.bf16.mxu0 %v1679_v25  ;;  %v1731_v60 = vpack.c.bf16 %v1024_v58, %v1023_v57  ;;  %v1026_v61 = vld [vmem:[%s2345_s3 + $0x18] sm:$0xff]  ;;  %v1027_v63 = vld [vmem:[%s2345_s3 + $0x20] sm:$0xff]  ;;  %v1028_v7 = vld [vmem:[%s2345_s3 + $0x28] sm:$0xff] }
 0x372   : > { %v1735_v62 = vpack.c.bf16 %v1026_v61, %v1025_v59  ;;  %v1739_v8 = vpack.c.bf16 %v1028_v7, %v1027_v63  ;;  %v1029_v9 = vld [vmem:[%s2345_s3 + $0x30] sm:$0xff]  ;;  %v1030_v10 = vld [vmem:[%s2345_s3 + $0x38] sm:$0xff]  ;;  %v1031_v11 = vld [vmem:[%s2345_s3 + $0x40] sm:$0xff] }
 0x373   : > { %1710 = vmatpush3.bf16.msra.mxu1 %v1707_v30  ;;  %v1743_v4 = vpack.c.bf16 %v1030_v10, %v1029_v9  ;;  %v1032_v5 = vld [vmem:[%s2345_s3 + $0x48] sm:$0xff]  ;;  %v1033_v13 = vld [vmem:[%s2345_s3 + $0x50] sm:$0xff]  ;;  %v1034_v14 = vld [vmem:[%s2345_s3 + $0x58] sm:$0xff] }
 0x374   : > { %1682 = vmatpush3.bf16.msra.mxu0 %v1679_v25  ;;  %1712 = vmatprep.subr.bf16.mxu1 %v1711_v36  ;;  %v1747_v12 = vpack.c.bf16 %v1032_v5, %v1031_v11  ;;  %v1751_v15 = vpack.c.bf16 %v1034_v14, %v1033_v13  ;;  %v1216_v23 = vld [vmem:[#allocation2 + $0x4] ss:$0 sm:$0xff]  ;;  %v1037_v44 = vld [vmem:[%s2345_s3 + $0x70] sm:$0xff]  ;;  %v1038_v45 = vld [vmem:[%s2345_s3 + $0x78] sm:$0xff] }
 0x375   : > { %1684 = vmatprep.subr.bf16.mxu0 %v1683_v31  ;;  %v1035_v41 = vld [vmem:[%s2345_s3 + $0x60] sm:$0xff]  ;;  %v1759_v1 = vpack.c.bf16 %v1038_v45, %v1037_v44 }
 0x376   : > { %v1219_v55 = vld [vmem:[#allocation2 + $0x7] ss:$0 sm:$0xff] }
 0x377   : > { %1714 = vmatpush3.bf16.msra.mxu1 %v1711_v36 }
 0x378   : > { %1686 = vmatpush3.bf16.msra.mxu0 %v1683_v31  ;;  %1716 = vmatprep.subr.bf16.mxu1 %v1715_v42  ;;  %v1217_v31 = vld [vmem:[#allocation2 + $0x5] ss:$0 sm:$0xff] }
 0x379   : > { %1688 = vmatprep.subr.bf16.mxu0 %v1687_v37 }
 0x37b   : > { %1718 = vmatpush3.bf16.msra.mxu1 %v1715_v42  ;;  %v1036_v42 = vld [vmem:[%s2345_s3 + $0x68] sm:$0xff] }
 0x37c   : > { %1690 = vmatpush3.bf16.msra.mxu0 %v1687_v37  ;;  %1720 = vmatprep.subr.bf16.mxu1 %v1719_v46 }
 0x37d   : > { %1692 = vmatprep.subr.bf16.mxu0 %v1691_v43 }
 0x37f   : > { %1722 = vmatpush3.bf16.msra.mxu1 %v1719_v46 }
 0x380   : > { %1694 = vmatpush3.bf16.msra.mxu0 %v1691_v43  ;;  %1724 = vmatprep.subr.bf16.mxu1 %v1723_v53  ;;  %v1755_v43 = vpack.c.bf16 %v1036_v42, %v1035_v41 }
 0x381   : > { %1696 = vmatprep.subr.bf16.mxu0 %v1695_v47 }
 0x383   : > { %1726 = vmatpush3.bf16.msra.mxu1 %v1723_v53 }
 0x384   : > { %1698 = vmatpush3.bf16.msra.mxu0 %v1695_v47  ;;  %1728 = vmatprep.subr.bf16.mxu1 %v1727_v56 }
 0x385   : > { %1732 = vmatprep.subr.bf16.mxu0 %v1731_v60 }
 0x387   : > { %1490 = vmatmul.mubr.f32.vlgmr.msra.gmra.mrb[0].mxu0 %v766_v48  ;;  %1730 = vmatpush3.bf16.msra.mxu1 %v1727_v56 }
 0x388   : > { %1492 = vmatprep.mubr.f32.mxu0 %v767_v49  ;;  %1779 = vmatprep.subr.bf16.mxu1 %v1731_v60  ;;  %v1218_v49 = vld [vmem:[#allocation2 + $0x6] ss:$0 sm:$0xff] }
 0x389   : > { %1734 = vmatpush3.bf16.msra.mxu0 %v1731_v60 }
 0x38a   : > { %1736 = vmatprep.subr.bf16.mxu0 %v1735_v62 }
 0x38b   : > { %1493 = vmatmul.mubr.f32.gmra.mrb[2].mxu0 %v768_v50 }
 0x38d   : > { %1738 = vmatpush3.bf16.msra.mxu0 %v1735_v62 }
 0x38e   : > { %1740 = vmatprep.subr.bf16.mxu0 %v1739_v8 }
 0x391   : > { %1742 = vmatpush3.bf16.msra.mxu0 %v1739_v8 }
 0x392   : > { %1744 = vmatprep.subr.bf16.mxu0 %v1743_v4 }
 0x395   : > { %1746 = vmatpush3.bf16.msra.mxu0 %v1743_v4 }
 0x396   : > { %1748 = vmatprep.subr.bf16.mxu0 %v1747_v12 }
 0x399   : > { %1750 = vmatpush3.bf16.msra.mxu0 %v1747_v12 }
 0x39a   : > { %1752 = vmatprep.subr.bf16.mxu0 %v1751_v15 }
 0x39d   : > { %1754 = vmatpush3.bf16.msra.mxu0 %v1751_v15 }
 0x39e   : > { %1756 = vmatprep.subr.bf16.mxu0 %v1755_v43 }
 0x3a1   : > { %1758 = vmatpush3.bf16.msra.mxu0 %v1755_v43 }
 0x3a2   : > { %1760 = vmatprep.subr.bf16.mxu0 %v1759_v1 }
 0x3a5   : > { %1762 = vmatpush3.bf16.msra.mxu0 %v1759_v1 }
 0x45a   : > { %v1491_v20 = vpop.f32.mrb[0].mxu0 }
 0x45b   : > { %v861_v21 = vadd.f32 %v1491_v20, %v788_v19  ;;  %v855_v22 = vpop.f32.mrb[1].mxu0 }
 0x45c   : > { %v856_v24 = vadd.f32 %v855_v22, %v788_v19 }
 0x45d   : > { %v875_v25 = vmax.f32 %v861_v21, 0.0 }
 0x45e   : > { %v874_v26 = vmax.f32 %v856_v24, 0.0  ;;  %v1494_v27 = vpop.f32.mrb[2].mxu0 }
 0x45f   : > { %v884_v28 = vmul.f32 %v1216_v23, %v875_v25  ;;  %v871_v29 = vadd.f32 %v1494_v27, %v788_v19  ;;  %v865_v30 = vpop.f32.mrb[3].mxu0 }
 0x460   : > { %v866_v32 = vadd.f32 %v865_v30, %v788_v19  ;;  %v883_v33 = vmul.f32 %v1216_v23, %v874_v26 }
 0x461   : > { %v877_v34 = vmax.f32 %v871_v29, 0.0  ;;  %v893_v38 = vadd.f32 %v1217_v31, %v884_v28 }
 0x462   : > { %v876_v35 = vmax.f32 %v866_v32, 0.0  ;;  %v892_v36 = vadd.f32 %v1217_v31, %v883_v33 }
 0x463   : > { %v886_v37 = vmul.f32 %v1216_v23, %v877_v34 }
 0x464   : > { %v885_v0 = vmul.f32 %v1216_v23, %v876_v35  ;;  %1527 = vmatprep.mubr.f32.mxu1 %v892_v36 }
 0x465   : > { %1528 = vmatmul.mubr.f32.vlgmr.msra.gmra.mrb[0].mxu1 %v893_v38  ;;  %v895_v40 = vadd.f32 %v1217_v31, %v886_v37 }
 0x466   : > { %v894_v39 = vadd.f32 %v1217_v31, %v885_v0  ;;  %1787 = vmatpush3.bf16.msra.mxu1 %v1731_v60 }
 0x467   : > { %1780 = vmatprep.subr.bf16.mxu1 %v1735_v62 }
 0x468   : > { %1530 = vmatprep.mubr.f32.mxu1 %v894_v39 }
 0x469   : > { %1531 = vmatmul.mubr.f32.gmra.mrb[2].mxu1 %v895_v40 }
 0x46a   : > { %1788 = vmatpush3.bf16.msra.mxu1 %v1735_v62 }
 0x46b   : > { %1781 = vmatprep.subr.bf16.mxu1 %v1739_v8 }
 0x46e   : > { %1789 = vmatpush3.bf16.msra.mxu1 %v1739_v8 }
 0x46f   : > { %1782 = vmatprep.subr.bf16.mxu1 %v1743_v4 }
 0x472   : > { %1790 = vmatpush3.bf16.msra.mxu1 %v1743_v4 }
 0x473   : > { %1783 = vmatprep.subr.bf16.mxu1 %v1747_v12 }
 0x476   : > { %1791 = vmatpush3.bf16.msra.mxu1 %v1747_v12 }
 0x477   : > { %1784 = vmatprep.subr.bf16.mxu1 %v1751_v15 }
 0x47a   : > { %1792 = vmatpush3.bf16.msra.mxu1 %v1751_v15 }
 0x47b   : > { %1785 = vmatprep.subr.bf16.mxu1 %v1755_v43 }
 0x47e   : > { %1793 = vmatpush3.bf16.msra.mxu1 %v1755_v43 }
 0x47f   : > { %1786 = vmatprep.subr.bf16.mxu1 %v1759_v1 }
 0x482   : > { %1794 = vmatpush3.bf16.msra.mxu1 %v1759_v1 }
 0x538   : > { %v1529_v46 = vpop.f32.mrb[0].mxu1 }
 0x539   : > { %v988_v47 = vadd.f32 %v1529_v46, %v915_v2  ;;  %v982_v48 = vpop.f32.mrb[1].mxu1 }
 0x53a   : > { %v983_v50 = vadd.f32 %v982_v48, %v915_v2 }
 0x53b   : > { %v1002_v51 = vmax.f32 %v988_v47, 0.0 }
 0x53c   : > { %v1001_v52 = vmax.f32 %v983_v50, 0.0  ;;  %v1532_v53 = vpop.f32.mrb[2].mxu1 }
 0x53d   : > { %v1011_v54 = vmul.f32 %v1218_v49, %v1002_v51  ;;  %v998_v56 = vadd.f32 %v1532_v53, %v915_v2  ;;  %v992_v57 = vpop.f32.mrb[3].mxu1 }
 0x53e   : > { %v1010_v58 = vmul.f32 %v1218_v49, %v1001_v52  ;;  %v993_v59 = vadd.f32 %v992_v57, %v915_v2 }
 0x53f   : > { %v1004_v60 = vmax.f32 %v998_v56, 0.0  ;;  %v1020_v3 = vadd.f32 %v1219_v55, %v1011_v54 }
 0x540   : > { %v1003_v61 = vmax.f32 %v993_v59, 0.0  ;;  %v1019_v62 = vadd.f32 %v1219_v55, %v1010_v58 }
 0x541   : > { %v1013_v63 = vmul.f32 %v1218_v49, %v1004_v60 }
 0x542   : > { %v1012_v7 = vmul.f32 %v1218_v49, %v1003_v61  ;;  %1565 = vmatprep.mubr.f32.mxu0 %v1019_v62 }
 0x543   : > { %1566 = vmatmul.mubr.f32.vlgmr.msra.gmra.mrb[4].mxu0 %v1020_v3  ;;  %v1022_v9 = vadd.f32 %v1219_v55, %v1013_v63 }
 0x544   : > { %v1021_v8 = vadd.f32 %v1219_v55, %v1012_v7 }
 0x546   : > { %1568 = vmatprep.mubr.f32.mxu1 %v1021_v8 }
 0x547   : > { %1569 = vmatmul.mubr.f32.vlgmr.msra.gmra.mrb[4].mxu1 %v1022_v9 }
 0x616   : > { %v1567_v10 = vpop.f32.mrb[4].mxu0 }
 0x617   : > { %v1115_v4 = vadd.f32 %v1567_v10, %v1981_v6  ;;  %v1109_v11 = vpop.f32.mrb[5].mxu0 }
 0x618   : > { %v1110_v5 = vadd.f32 %v1981_v6, %v1109_v11 }
 0x619   : > { %1129 = vst [vmem:[%s1993_s29 + $0x8] sm:$0xff] %v1115_v4 }
 0x61a   : > { %1128 = vst [vmem:[%s1993_s29] sm:$0xff] %v1110_v5  ;;  %v1570_v12 = vpop.f32.mrb[4].mxu1 }
 0x61b   : > { %v1125_v13 = vadd.f32 %v1570_v12, %v1981_v6  ;;  %v1119_v14 = vpop.f32.mrb[5].mxu1 }
 0x61c   : > { %v1120_v15 = vadd.f32 %v1981_v6, %v1119_v14 }
 0x61d   : > { %1131 = vst [vmem:[%s1993_s29 + $0x18] sm:$0xff] %v1125_v13 }
 0x61e   : > { %1130 = vst [vmem:[%s1993_s29 + $0x10] sm:$0xff] %v1120_v15 }
 0x61f PF: > { %s15_s22 = sadd.s32 1, %s1878_s22   ;;  %s2348_s18 = smov %s1870_s20 }
 0x620   : > { %p12_p2 = scmp.ge.s32.totalorder %s15_s22, 14   ;;  %s2349_s19 = smov %s1874_s21 }
 0x621   : > { %s2350_s20 = smov %s2353_s23  ;;  %s2351_s21 = smov %s2357_s24 }
 0x622   :  { %14 = sbr.rel (!%p12_p2) target bundleno = 3 (0x3), region = 94 }

</bundles_post_ra>
